<compile_context>
chip_gen: v7x
topology: tpu7x:2x2x1
jax: 0.10.0
libtpu: 0.0.40
codegen_flags: <defaults>
</compile_context>

<pallas_src>
import math

import jax
import jax.numpy as jnp
from jax.experimental import pallas as pl

# ---- static configuration (small, consistent with the module's forward) ----
B, T, D = 2, 8, 32          # batch, sequence length, dim_model
NUM_HEADS = 4
HEAD_DIM = D // NUM_HEADS
FFN = 64                    # feed-forward hidden dim
NUM_LAYERS = 2
NORM_EPS = 1e-5
NEG_INF = -1e9              # additive mask value (avoids NaN vs. -inf)
BT = B * T


# ----------------------------- helpers (in-kernel values) -------------------
def _layernorm(x, w, b, eps):
    mu = jnp.mean(x, axis=-1, keepdims=True)
    var = jnp.mean(jnp.square(x - mu), axis=-1, keepdims=True)
    return (x - mu) * jax.lax.rsqrt(var + eps) * w + b


# ----------------------------- fused Pallas kernel ---------------------------
def fused_encoder_kernel(x_ref, pe_ref, mask_ref,
                         ln_ref, wqkv_ref, bqkv_ref, wo_ref, bo_ref,
                         w1_ref, b1_ref, w2_ref, b2_ref, tail_ref,
                         o_ref):
    f32 = jnp.float32

    # positional encoding (dropout_pe -> identity in eval)
    x = x_ref[...] + pe_ref[...]                 # (B*T, D)
    mask = mask_ref[...]                         # (B, T, T) additive mask

    ln1w, ln1b = ln_ref[0:1, :], ln_ref[1:2, :]
    ln2w, ln2b = ln_ref[2:3, :], ln_ref[3:4, :]
    wqkv, bqkv = wqkv_ref[...], bqkv_ref[...]
    wo, bo = wo_ref[...], bo_ref[...]
    w1, b1 = w1_ref[...], b1_ref[...]
    w2, b2 = w2_ref[...], b2_ref[...]

    # copy.deepcopy(encoder_layer) in the module -> all layers share identical
    # initial parameters, so we reuse one packed parameter set per layer.
    for _ in range(NUM_LAYERS):
        # --- self-attention block (norm_first=True) ---
        h = _layernorm(x, ln1w, ln1b, NORM_EPS)
        qkv = jnp.dot(h, wqkv, preferred_element_type=f32) + bqkv    # (BT, 3D)
        q = qkv[:, 0 * D:1 * D].reshape(B, T, D)   # scale pre-folded into Wq/bq
        k = qkv[:, 1 * D:2 * D].reshape(B, T, D)
        v = qkv[:, 2 * D:3 * D].reshape(B, T, D)

        attn = jnp.zeros((BT, D), f32)
        for hd in range(NUM_HEADS):
            lo = hd * HEAD_DIM
            qh = q[:, :, lo:lo + HEAD_DIM]         # (B, T, HEAD_DIM)
            kh = k[:, :, lo:lo + HEAD_DIM]
            vh = v[:, :, lo:lo + HEAD_DIM]
            # scores (B, T, T) = qh @ kh^T per batch, already scaled
            s = jnp.einsum('bqd,bkd->bqk', qh, kh,
                           preferred_element_type=f32) + mask
            s = s - jnp.max(s, axis=-1, keepdims=True)
            p = jnp.exp(s)
            p = p * pl.reciprocal(jnp.sum(p, axis=-1, keepdims=True),
                                  approx=True)
            ctx = jnp.einsum('bqk,bkd->bqd', p, vh,
                             preferred_element_type=f32)             # (B,T,hd)
            # concat(ctx_h) @ Wo == sum_h ctx_h @ Wo[h]
            attn = attn + jnp.dot(ctx.reshape(BT, HEAD_DIM),
                                  wo[lo:lo + HEAD_DIM, :],
                                  preferred_element_type=f32)
        x = x + attn + bo

        # --- feed-forward block (norm_first=True) ---
        h2 = _layernorm(x, ln2w, ln2b, NORM_EPS)
        f = jnp.dot(h2, w1, preferred_element_type=f32) + b1
        f = jnp.maximum(f, 0.0)
        x = x + jnp.dot(f, w2, preferred_element_type=f32) + b2

    # tail norm (add_tailnorm and norm_first -> LayerNorm; else Identity)
    o_ref[...] = _layernorm(x, tail_ref[0:1, :], tail_ref[1:2, :], NORM_EPS)


# ----------------------------- wrappers --------------------------------------
def sinusoidal_pe(seq_len, dim):
    pos = jnp.arange(seq_len, dtype=jnp.float32)[:, None]
    div = jnp.exp(jnp.arange(0, dim, 2, dtype=jnp.float32)
                  * (-math.log(10000.0) / dim))
    pe = jnp.zeros((seq_len, dim), jnp.float32)
    pe = pe.at[:, 0::2].set(jnp.sin(pos * div))
    pe = pe.at[:, 1::2].set(jnp.cos(pos * div))
    return pe                                   # (T, D)


def transformer_encoder_forward(feature, causal_mask, src_key_padding_mask,
                                layer_params, tail_w, tail_b):
    # flatten activations to a (B*T, D) slab; positional encoding tiled to match
    x_flat = feature.astype(jnp.float32).reshape(BT, D)
    pe_flat = jnp.tile(sinusoidal_pe(T, D), (B, 1))                    # (BT, D)

    # combine causal + key-padding masks into one additive mask (B, T, T)
    masked = causal_mask[None, :, :] | src_key_padding_mask[:, None, :]
    mask_add = jnp.where(masked, jnp.float32(NEG_INF), jnp.float32(0.0))

    # host-side packing: fused QKV weights (scale folded into Wq/bq), stacked norms
    p = layer_params
    scale = 1.0 / math.sqrt(HEAD_DIM)
    ln_stack = jnp.concatenate([p["ln1w"], p["ln1b"], p["ln2w"], p["ln2b"]],
                               axis=0)                                 # (4, D)
    wqkv = jnp.concatenate([p["wq"] * scale, p["wk"], p["wv"]], axis=1)  # (D, 3D)
    bqkv = jnp.concatenate([p["bq"] * scale, p["bk"], p["bv"]], axis=1)  # (1, 3D)
    tail = jnp.concatenate([tail_w, tail_b], axis=0)                   # (2, D)

    # single fused pallas_call, no grid: every operand is one VMEM-resident block
    out_flat = pl.pallas_call(
        fused_encoder_kernel,
        out_shape=jax.ShapeDtypeStruct((BT, D), jnp.float32),
    )(x_flat, pe_flat, mask_add, ln_stack, wqkv, bqkv,
      p["wo"], p["bo"], p["w1"], p["b1"], p["w2"], p["b2"], tail)
    return out_flat.reshape(B, T, D)


def init_layer_params(key):
    ks = jax.random.split(key, 6)
    s_in = 1.0 / math.sqrt(D)
    s_ff = 1.0 / math.sqrt(FFN)
    w = lambda k, shape, s: jax.random.normal(k, shape, jnp.float32) * s
    return dict(
        ln1w=jnp.ones((1, D), jnp.float32), ln1b=jnp.zeros((1, D), jnp.float32),
        wq=w(ks[0], (D, D), s_in), bq=jnp.zeros((1, D), jnp.float32),
        wk=w(ks[1], (D, D), s_in), bk=jnp.zeros((1, D), jnp.float32),
        wv=w(ks[2], (D, D), s_in), bv=jnp.zeros((1, D), jnp.float32),
        wo=w(ks[3], (D, D), s_in), bo=jnp.zeros((1, D), jnp.float32),
        ln2w=jnp.ones((1, D), jnp.float32), ln2b=jnp.zeros((1, D), jnp.float32),
        w1=w(ks[4], (D, FFN), s_in), b1=jnp.zeros((1, FFN), jnp.float32),
        w2=w(ks[5], (FFN, D), s_ff), b2=jnp.zeros((1, D), jnp.float32),
    )


if __name__ == "__main__":
    key = jax.random.PRNGKey(0)
    k_feat, k_params = jax.random.split(key)

    feature = jax.random.normal(k_feat, (B, T, D), jnp.float32)
    # causal mask: True above the diagonal = not allowed
    causal_mask = jnp.triu(jnp.ones((T, T), dtype=bool), k=1)
    # padding mask: True = padded key position (pad out the last 2 steps of batch 1)
    src_key_padding_mask = jnp.zeros((B, T), dtype=bool).at[1, T - 2:].set(True)

    layer_params = init_layer_params(k_params)
    tail_w = jnp.ones((1, D), jnp.float32)
    tail_b = jnp.zeros((1, D), jnp.float32)

    out = transformer_encoder_forward(feature, causal_mask, src_key_padding_mask,
                                      layer_params, tail_w, tail_b)
    out = jax.block_until_ready(out)
    assert out.shape == (B, T, D)
    assert bool(jnp.all(jnp.isfinite(out)))
    print("KERNEL_OK")
</pallas_src>

<mosaic_0001>
module attributes {stable_mosaic.version = 11 : i64} {
  func.func @fused_encoder_kernel(%arg0: memref<16x32xf32, #tpu.memory_space<vmem>>, %arg1: memref<16x32xf32, #tpu.memory_space<vmem>>, %arg2: memref<2x8x8xf32, #tpu.memory_space<vmem>>, %arg3: memref<4x32xf32, #tpu.memory_space<vmem>>, %arg4: memref<32x96xf32, #tpu.memory_space<vmem>>, %arg5: memref<1x96xf32, #tpu.memory_space<vmem>>, %arg6: memref<32x32xf32, #tpu.memory_space<vmem>>, %arg7: memref<1x32xf32, #tpu.memory_space<vmem>>, %arg8: memref<32x64xf32, #tpu.memory_space<vmem>>, %arg9: memref<1x64xf32, #tpu.memory_space<vmem>>, %arg10: memref<64x32xf32, #tpu.memory_space<vmem>>, %arg11: memref<1x32xf32, #tpu.memory_space<vmem>>, %arg12: memref<2x32xf32, #tpu.memory_space<vmem>>, %arg13: memref<16x32xf32, #tpu.memory_space<vmem>>) attributes {dimension_semantics = [], scalar_prefetch = 0 : i64, scratch_operands = 0 : i64, tpu.core_type = #tpu.core_type<tc>} {
    %c0 = arith.constant 0 : index
    %c0_0 = arith.constant 0 : index
    %0 = vector.load %arg0[%c0, %c0_0] : memref<16x32xf32, #tpu.memory_space<vmem>>, vector<16x32xf32>
    %c0_1 = arith.constant 0 : index
    %c0_2 = arith.constant 0 : index
    %1 = vector.load %arg1[%c0_1, %c0_2] : memref<16x32xf32, #tpu.memory_space<vmem>>, vector<16x32xf32>
    %2 = arith.addf %0, %1 : vector<16x32xf32>
    %c0_3 = arith.constant 0 : index
    %c0_4 = arith.constant 0 : index
    %c0_5 = arith.constant 0 : index
    %3 = vector.load %arg2[%c0_3, %c0_4, %c0_5] : memref<2x8x8xf32, #tpu.memory_space<vmem>>, vector<2x8x8xf32>
    %c0_6 = arith.constant 0 : index
    %c0_7 = arith.constant 0 : index
    %4 = vector.load %arg3[%c0_6, %c0_7] : memref<4x32xf32, #tpu.memory_space<vmem>>, vector<1x32xf32>
    %c1 = arith.constant 1 : index
    %c0_8 = arith.constant 0 : index
    %5 = vector.load %arg3[%c1, %c0_8] : memref<4x32xf32, #tpu.memory_space<vmem>>, vector<1x32xf32>
    %c2 = arith.constant 2 : index
    %c0_9 = arith.constant 0 : index
    %6 = vector.load %arg3[%c2, %c0_9] : memref<4x32xf32, #tpu.memory_space<vmem>>, vector<1x32xf32>
    %c3 = arith.constant 3 : index
    %c0_10 = arith.constant 0 : index
    %7 = vector.load %arg3[%c3, %c0_10] : memref<4x32xf32, #tpu.memory_space<vmem>>, vector<1x32xf32>
    %c0_11 = arith.constant 0 : index
    %c0_12 = arith.constant 0 : index
    %8 = vector.load %arg4[%c0_11, %c0_12] : memref<32x96xf32, #tpu.memory_space<vmem>>, vector<32x96xf32>
    %c0_13 = arith.constant 0 : index
    %c0_14 = arith.constant 0 : index
    %9 = vector.load %arg5[%c0_13, %c0_14] : memref<1x96xf32, #tpu.memory_space<vmem>>, vector<1x96xf32>
    %c0_15 = arith.constant 0 : index
    %c0_16 = arith.constant 0 : index
    %10 = vector.load %arg6[%c0_15, %c0_16] : memref<32x32xf32, #tpu.memory_space<vmem>>, vector<32x32xf32>
    %c0_17 = arith.constant 0 : index
    %c0_18 = arith.constant 0 : index
    %11 = vector.load %arg7[%c0_17, %c0_18] : memref<1x32xf32, #tpu.memory_space<vmem>>, vector<1x32xf32>
    %c0_19 = arith.constant 0 : index
    %c0_20 = arith.constant 0 : index
    %12 = vector.load %arg8[%c0_19, %c0_20] : memref<32x64xf32, #tpu.memory_space<vmem>>, vector<32x64xf32>
    %c0_21 = arith.constant 0 : index
    %c0_22 = arith.constant 0 : index
    %13 = vector.load %arg9[%c0_21, %c0_22] : memref<1x64xf32, #tpu.memory_space<vmem>>, vector<1x64xf32>
    %c0_23 = arith.constant 0 : index
    %c0_24 = arith.constant 0 : index
    %14 = vector.load %arg10[%c0_23, %c0_24] : memref<64x32xf32, #tpu.memory_space<vmem>>, vector<64x32xf32>
    %c0_25 = arith.constant 0 : index
    %c0_26 = arith.constant 0 : index
    %15 = vector.load %arg11[%c0_25, %c0_26] : memref<1x32xf32, #tpu.memory_space<vmem>>, vector<1x32xf32>
    %cst = arith.constant dense<0.000000e+00> : vector<16xf32>
    %16 = vector.multi_reduction <add>, %2, %cst [1] : vector<16x32xf32> to vector<16xf32>
    %17 = vector.shape_cast %16 : vector<16xf32> to vector<16x1xf32>
    %cst_27 = arith.constant 3.200000e+01 : f32
    %18 = vector.broadcast %cst_27 : f32 to vector<16x1xf32>
    %19 = arith.divf %17, %18 : vector<16x1xf32>
    %20 = vector.broadcast %19 : vector<16x1xf32> to vector<16x32xf32>
    %21 = arith.subf %2, %20 : vector<16x32xf32>
    %22 = arith.mulf %21, %21 : vector<16x32xf32>
    %cst_28 = arith.constant dense<0.000000e+00> : vector<16xf32>
    %23 = vector.multi_reduction <add>, %22, %cst_28 [1] : vector<16x32xf32> to vector<16xf32>
    %24 = vector.shape_cast %23 : vector<16xf32> to vector<16x1xf32>
    %cst_29 = arith.constant 3.200000e+01 : f32
    %25 = vector.broadcast %cst_29 : f32 to vector<16x1xf32>
    %26 = arith.divf %24, %25 : vector<16x1xf32>
    %27 = vector.broadcast %19 : vector<16x1xf32> to vector<16x32xf32>
    %28 = arith.subf %2, %27 : vector<16x32xf32>
    %cst_30 = arith.constant 9.99999974E-6 : f32
    %29 = vector.broadcast %cst_30 : f32 to vector<16x1xf32>
    %30 = arith.addf %26, %29 : vector<16x1xf32>
    %31 = math.rsqrt %30 : vector<16x1xf32>
    %32 = vector.broadcast %31 : vector<16x1xf32> to vector<16x32xf32>
    %33 = arith.mulf %28, %32 : vector<16x32xf32>
    %34 = vector.broadcast %4 : vector<1x32xf32> to vector<16x32xf32>
    %35 = arith.mulf %33, %34 : vector<16x32xf32>
    %36 = vector.broadcast %5 : vector<1x32xf32> to vector<16x32xf32>
    %37 = arith.addf %35, %36 : vector<16x32xf32>
    %cst_31 = arith.constant dense<0.000000e+00> : vector<16x96xf32>
    %38 = tpu.matmul %37, %8, %cst_31 {dimension_numbers = #tpu.dot_dimension_numbers<[1], [0], [0], [1], [0, 0, 1, 1], [], []>} : vector<16x32xf32>, vector<32x96xf32>, vector<16x96xf32> -> vector<16x96xf32>
    %39 = vector.broadcast %9 : vector<1x96xf32> to vector<16x96xf32>
    %40 = arith.addf %38, %39 : vector<16x96xf32>
    %41 = vector.extract_strided_slice %40 {offsets = [0, 0], sizes = [16, 32], strides = [1, 1]} : vector<16x96xf32> to vector<16x32xf32>
    %42 = vector.shape_cast %41 : vector<16x32xf32> to vector<2x8x32xf32>
    %43 = vector.extract_strided_slice %40 {offsets = [0, 32], sizes = [16, 32], strides = [1, 1]} : vector<16x96xf32> to vector<16x32xf32>
    %44 = vector.shape_cast %43 : vector<16x32xf32> to vector<2x8x32xf32>
    %45 = vector.extract_strided_slice %40 {offsets = [0, 64], sizes = [16, 32], strides = [1, 1]} : vector<16x96xf32> to vector<16x32xf32>
    %46 = vector.shape_cast %45 : vector<16x32xf32> to vector<2x8x32xf32>
    %cst_32 = arith.constant 0.000000e+00 : f32
    %47 = vector.broadcast %cst_32 : f32 to vector<16x32xf32>
    %48 = vector.extract_strided_slice %42 {offsets = [0, 0, 0], sizes = [2, 8, 8], strides = [1, 1, 1]} : vector<2x8x32xf32> to vector<2x8x8xf32>
    %49 = vector.extract_strided_slice %44 {offsets = [0, 0, 0], sizes = [2, 8, 8], strides = [1, 1, 1]} : vector<2x8x32xf32> to vector<2x8x8xf32>
    %50 = vector.extract_strided_slice %46 {offsets = [0, 0, 0], sizes = [2, 8, 8], strides = [1, 1, 1]} : vector<2x8x32xf32> to vector<2x8x8xf32>
    "tpu.trace_start"() <{level = 10 : i32, message = "bqd,bkd->bqk"}> : () -> ()
    %cst_33 = arith.constant dense<0.000000e+00> : vector<2x8x8xf32>
    %51 = tpu.matmul %48, %49, %cst_33 {dimension_numbers = #tpu.dot_dimension_numbers<[2], [2], [1], [1], [0, 0, 0, 1, 1, 1], [0], [0]>} : vector<2x8x8xf32>, vector<2x8x8xf32>, vector<2x8x8xf32> -> vector<2x8x8xf32>
    "tpu.trace_stop"() : () -> ()
    %52 = arith.addf %51, %3 : vector<2x8x8xf32>
    %cst_34 = arith.constant dense<0xFF800000> : vector<2x8xf32>
    %53 = vector.multi_reduction <maximumf>, %52, %cst_34 [2] : vector<2x8x8xf32> to vector<2x8xf32>
    %54 = vector.shape_cast %53 : vector<2x8xf32> to vector<2x8x1xf32>
    %55 = vector.broadcast %54 : vector<2x8x1xf32> to vector<2x8x8xf32>
    %56 = arith.subf %52, %55 : vector<2x8x8xf32>
    %57 = math.exp %56 : vector<2x8x8xf32>
    %cst_35 = arith.constant dense<0.000000e+00> : vector<2x8xf32>
    %58 = vector.multi_reduction <add>, %57, %cst_35 [2] : vector<2x8x8xf32> to vector<2x8xf32>
    %59 = vector.shape_cast %58 : vector<2x8xf32> to vector<2x8x1xf32>
    %60 = tpu.reciprocal %59 {approx = true} : vector<2x8x1xf32> -> vector<2x8x1xf32>
    %61 = vector.broadcast %60 : vector<2x8x1xf32> to vector<2x8x8xf32>
    %62 = arith.mulf %57, %61 : vector<2x8x8xf32>
    "tpu.trace_start"() <{level = 10 : i32, message = "bqk,bkd->bqd"}> : () -> ()
    %cst_36 = arith.constant dense<0.000000e+00> : vector<2x8x8xf32>
    %63 = tpu.matmul %62, %50, %cst_36 {dimension_numbers = #tpu.dot_dimension_numbers<[2], [1], [1], [2], [0, 0, 0, 1, 1, 2], [0], [0]>} : vector<2x8x8xf32>, vector<2x8x8xf32>, vector<2x8x8xf32> -> vector<2x8x8xf32>
    "tpu.trace_stop"() : () -> ()
    %64 = vector.shape_cast %63 : vector<2x8x8xf32> to vector<16x8xf32>
    %65 = vector.extract_strided_slice %10 {offsets = [0, 0], sizes = [8, 32], strides = [1, 1]} : vector<32x32xf32> to vector<8x32xf32>
    %cst_37 = arith.constant dense<0.000000e+00> : vector<16x32xf32>
    %66 = tpu.matmul %64, %65, %cst_37 {dimension_numbers = #tpu.dot_dimension_numbers<[1], [0], [0], [1], [0, 0, 1, 1], [], []>} : vector<16x8xf32>, vector<8x32xf32>, vector<16x32xf32> -> vector<16x32xf32>
    %67 = arith.addf %47, %66 : vector<16x32xf32>
    %68 = vector.extract_strided_slice %42 {offsets = [0, 0, 8], sizes = [2, 8, 8], strides = [1, 1, 1]} : vector<2x8x32xf32> to vector<2x8x8xf32>
    %69 = vector.extract_strided_slice %44 {offsets = [0, 0, 8], sizes = [2, 8, 8], strides = [1, 1, 1]} : vector<2x8x32xf32> to vector<2x8x8xf32>
    %70 = vector.extract_strided_slice %46 {offsets = [0, 0, 8], sizes = [2, 8, 8], strides = [1, 1, 1]} : vector<2x8x32xf32> to vector<2x8x8xf32>
    "tpu.trace_start"() <{level = 10 : i32, message = "bqd,bkd->bqk"}> : () -> ()
    %cst_38 = arith.constant dense<0.000000e+00> : vector<2x8x8xf32>
    %71 = tpu.matmul %68, %69, %cst_38 {dimension_numbers = #tpu.dot_dimension_numbers<[2], [2], [1], [1], [0, 0, 0, 1, 1, 1], [0], [0]>} : vector<2x8x8xf32>, vector<2x8x8xf32>, vector<2x8x8xf32> -> vector<2x8x8xf32>
    "tpu.trace_stop"() : () -> ()
    %72 = arith.addf %71, %3 : vector<2x8x8xf32>
    %cst_39 = arith.constant dense<0xFF800000> : vector<2x8xf32>
    %73 = vector.multi_reduction <maximumf>, %72, %cst_39 [2] : vector<2x8x8xf32> to vector<2x8xf32>
    %74 = vector.shape_cast %73 : vector<2x8xf32> to vector<2x8x1xf32>
    %75 = vector.broadcast %74 : vector<2x8x1xf32> to vector<2x8x8xf32>
    %76 = arith.subf %72, %75 : vector<2x8x8xf32>
    %77 = math.exp %76 : vector<2x8x8xf32>
    %cst_40 = arith.constant dense<0.000000e+00> : vector<2x8xf32>
    %78 = vector.multi_reduction <add>, %77, %cst_40 [2] : vector<2x8x8xf32> to vector<2x8xf32>
    %79 = vector.shape_cast %78 : vector<2x8xf32> to vector<2x8x1xf32>
    %80 = tpu.reciprocal %79 {approx = true} : vector<2x8x1xf32> -> vector<2x8x1xf32>
    %81 = vector.broadcast %80 : vector<2x8x1xf32> to vector<2x8x8xf32>
    %82 = arith.mulf %77, %81 : vector<2x8x8xf32>
    "tpu.trace_start"() <{level = 10 : i32, message = "bqk,bkd->bqd"}> : () -> ()
    %cst_41 = arith.constant dense<0.000000e+00> : vector<2x8x8xf32>
    %83 = tpu.matmul %82, %70, %cst_41 {dimension_numbers = #tpu.dot_dimension_numbers<[2], [1], [1], [2], [0, 0, 0, 1, 1, 2], [0], [0]>} : vector<2x8x8xf32>, vector<2x8x8xf32>, vector<2x8x8xf32> -> vector<2x8x8xf32>
    "tpu.trace_stop"() : () -> ()
    %84 = vector.shape_cast %83 : vector<2x8x8xf32> to vector<16x8xf32>
    %85 = vector.extract_strided_slice %10 {offsets = [8, 0], sizes = [8, 32], strides = [1, 1]} : vector<32x32xf32> to vector<8x32xf32>
    %cst_42 = arith.constant dense<0.000000e+00> : vector<16x32xf32>
    %86 = tpu.matmul %84, %85, %cst_42 {dimension_numbers = #tpu.dot_dimension_numbers<[1], [0], [0], [1], [0, 0, 1, 1], [], []>} : vector<16x8xf32>, vector<8x32xf32>, vector<16x32xf32> -> vector<16x32xf32>
    %87 = arith.addf %67, %86 : vector<16x32xf32>
    %88 = vector.extract_strided_slice %42 {offsets = [0, 0, 16], sizes = [2, 8, 8], strides = [1, 1, 1]} : vector<2x8x32xf32> to vector<2x8x8xf32>
    %89 = vector.extract_strided_slice %44 {offsets = [0, 0, 16], sizes = [2, 8, 8], strides = [1, 1, 1]} : vector<2x8x32xf32> to vector<2x8x8xf32>
    %90 = vector.extract_strided_slice %46 {offsets = [0, 0, 16], sizes = [2, 8, 8], strides = [1, 1, 1]} : vector<2x8x32xf32> to vector<2x8x8xf32>
    "tpu.trace_start"() <{level = 10 : i32, message = "bqd,bkd->bqk"}> : () -> ()
    %cst_43 = arith.constant dense<0.000000e+00> : vector<2x8x8xf32>
    %91 = tpu.matmul %88, %89, %cst_43 {dimension_numbers = #tpu.dot_dimension_numbers<[2], [2], [1], [1], [0, 0, 0, 1, 1, 1], [0], [0]>} : vector<2x8x8xf32>, vector<2x8x8xf32>, vector<2x8x8xf32> -> vector<2x8x8xf32>
    "tpu.trace_stop"() : () -> ()
    %92 = arith.addf %91, %3 : vector<2x8x8xf32>
    %cst_44 = arith.constant dense<0xFF800000> : vector<2x8xf32>
    %93 = vector.multi_reduction <maximumf>, %92, %cst_44 [2] : vector<2x8x8xf32> to vector<2x8xf32>
    %94 = vector.shape_cast %93 : vector<2x8xf32> to vector<2x8x1xf32>
    %95 = vector.broadcast %94 : vector<2x8x1xf32> to vector<2x8x8xf32>
    %96 = arith.subf %92, %95 : vector<2x8x8xf32>
    %97 = math.exp %96 : vector<2x8x8xf32>
    %cst_45 = arith.constant dense<0.000000e+00> : vector<2x8xf32>
    %98 = vector.multi_reduction <add>, %97, %cst_45 [2] : vector<2x8x8xf32> to vector<2x8xf32>
    %99 = vector.shape_cast %98 : vector<2x8xf32> to vector<2x8x1xf32>
    %100 = tpu.reciprocal %99 {approx = true} : vector<2x8x1xf32> -> vector<2x8x1xf32>
    %101 = vector.broadcast %100 : vector<2x8x1xf32> to vector<2x8x8xf32>
    %102 = arith.mulf %97, %101 : vector<2x8x8xf32>
    "tpu.trace_start"() <{level = 10 : i32, message = "bqk,bkd->bqd"}> : () -> ()
    %cst_46 = arith.constant dense<0.000000e+00> : vector<2x8x8xf32>
    %103 = tpu.matmul %102, %90, %cst_46 {dimension_numbers = #tpu.dot_dimension_numbers<[2], [1], [1], [2], [0, 0, 0, 1, 1, 2], [0], [0]>} : vector<2x8x8xf32>, vector<2x8x8xf32>, vector<2x8x8xf32> -> vector<2x8x8xf32>
    "tpu.trace_stop"() : () -> ()
    %104 = vector.shape_cast %103 : vector<2x8x8xf32> to vector<16x8xf32>
    %105 = vector.extract_strided_slice %10 {offsets = [16, 0], sizes = [8, 32], strides = [1, 1]} : vector<32x32xf32> to vector<8x32xf32>
    %cst_47 = arith.constant dense<0.000000e+00> : vector<16x32xf32>
    %106 = tpu.matmul %104, %105, %cst_47 {dimension_numbers = #tpu.dot_dimension_numbers<[1], [0], [0], [1], [0, 0, 1, 1], [], []>} : vector<16x8xf32>, vector<8x32xf32>, vector<16x32xf32> -> vector<16x32xf32>
    %107 = arith.addf %87, %106 : vector<16x32xf32>
    %108 = vector.extract_strided_slice %42 {offsets = [0, 0, 24], sizes = [2, 8, 8], strides = [1, 1, 1]} : vector<2x8x32xf32> to vector<2x8x8xf32>
    %109 = vector.extract_strided_slice %44 {offsets = [0, 0, 24], sizes = [2, 8, 8], strides = [1, 1, 1]} : vector<2x8x32xf32> to vector<2x8x8xf32>
    %110 = vector.extract_strided_slice %46 {offsets = [0, 0, 24], sizes = [2, 8, 8], strides = [1, 1, 1]} : vector<2x8x32xf32> to vector<2x8x8xf32>
    "tpu.trace_start"() <{level = 10 : i32, message = "bqd,bkd->bqk"}> : () -> ()
    %cst_48 = arith.constant dense<0.000000e+00> : vector<2x8x8xf32>
    %111 = tpu.matmul %108, %109, %cst_48 {dimension_numbers = #tpu.dot_dimension_numbers<[2], [2], [1], [1], [0, 0, 0, 1, 1, 1], [0], [0]>} : vector<2x8x8xf32>, vector<2x8x8xf32>, vector<2x8x8xf32> -> vector<2x8x8xf32>
    "tpu.trace_stop"() : () -> ()
    %112 = arith.addf %111, %3 : vector<2x8x8xf32>
    %cst_49 = arith.constant dense<0xFF800000> : vector<2x8xf32>
    %113 = vector.multi_reduction <maximumf>, %112, %cst_49 [2] : vector<2x8x8xf32> to vector<2x8xf32>
    %114 = vector.shape_cast %113 : vector<2x8xf32> to vector<2x8x1xf32>
    %115 = vector.broadcast %114 : vector<2x8x1xf32> to vector<2x8x8xf32>
    %116 = arith.subf %112, %115 : vector<2x8x8xf32>
    %117 = math.exp %116 : vector<2x8x8xf32>
    %cst_50 = arith.constant dense<0.000000e+00> : vector<2x8xf32>
    %118 = vector.multi_reduction <add>, %117, %cst_50 [2] : vector<2x8x8xf32> to vector<2x8xf32>
    %119 = vector.shape_cast %118 : vector<2x8xf32> to vector<2x8x1xf32>
    %120 = tpu.reciprocal %119 {approx = true} : vector<2x8x1xf32> -> vector<2x8x1xf32>
    %121 = vector.broadcast %120 : vector<2x8x1xf32> to vector<2x8x8xf32>
    %122 = arith.mulf %117, %121 : vector<2x8x8xf32>
    "tpu.trace_start"() <{level = 10 : i32, message = "bqk,bkd->bqd"}> : () -> ()
    %cst_51 = arith.constant dense<0.000000e+00> : vector<2x8x8xf32>
    %123 = tpu.matmul %122, %110, %cst_51 {dimension_numbers = #tpu.dot_dimension_numbers<[2], [1], [1], [2], [0, 0, 0, 1, 1, 2], [0], [0]>} : vector<2x8x8xf32>, vector<2x8x8xf32>, vector<2x8x8xf32> -> vector<2x8x8xf32>
    "tpu.trace_stop"() : () -> ()
    %124 = vector.shape_cast %123 : vector<2x8x8xf32> to vector<16x8xf32>
    %125 = vector.extract_strided_slice %10 {offsets = [24, 0], sizes = [8, 32], strides = [1, 1]} : vector<32x32xf32> to vector<8x32xf32>
    %cst_52 = arith.constant dense<0.000000e+00> : vector<16x32xf32>
    %126 = tpu.matmul %124, %125, %cst_52 {dimension_numbers = #tpu.dot_dimension_numbers<[1], [0], [0], [1], [0, 0, 1, 1], [], []>} : vector<16x8xf32>, vector<8x32xf32>, vector<16x32xf32> -> vector<16x32xf32>
    %127 = arith.addf %107, %126 : vector<16x32xf32>
    %128 = arith.addf %2, %127 : vector<16x32xf32>
    %129 = vector.broadcast %11 : vector<1x32xf32> to vector<16x32xf32>
    %130 = arith.addf %128, %129 : vector<16x32xf32>
    %cst_53 = arith.constant dense<0.000000e+00> : vector<16xf32>
    %131 = vector.multi_reduction <add>, %130, %cst_53 [1] : vector<16x32xf32> to vector<16xf32>
    %132 = vector.shape_cast %131 : vector<16xf32> to vector<16x1xf32>
    %cst_54 = arith.constant 3.200000e+01 : f32
    %133 = vector.broadcast %cst_54 : f32 to vector<16x1xf32>
    %134 = arith.divf %132, %133 : vector<16x1xf32>
    %135 = vector.broadcast %134 : vector<16x1xf32> to vector<16x32xf32>
    %136 = arith.subf %130, %135 : vector<16x32xf32>
    %137 = arith.mulf %136, %136 : vector<16x32xf32>
    %cst_55 = arith.constant dense<0.000000e+00> : vector<16xf32>
    %138 = vector.multi_reduction <add>, %137, %cst_55 [1] : vector<16x32xf32> to vector<16xf32>
    %139 = vector.shape_cast %138 : vector<16xf32> to vector<16x1xf32>
    %cst_56 = arith.constant 3.200000e+01 : f32
    %140 = vector.broadcast %cst_56 : f32 to vector<16x1xf32>
    %141 = arith.divf %139, %140 : vector<16x1xf32>
    %142 = vector.broadcast %134 : vector<16x1xf32> to vector<16x32xf32>
    %143 = arith.subf %130, %142 : vector<16x32xf32>
    %cst_57 = arith.constant 9.99999974E-6 : f32
    %144 = vector.broadcast %cst_57 : f32 to vector<16x1xf32>
    %145 = arith.addf %141, %144 : vector<16x1xf32>
    %146 = math.rsqrt %145 : vector<16x1xf32>
    %147 = vector.broadcast %146 : vector<16x1xf32> to vector<16x32xf32>
    %148 = arith.mulf %143, %147 : vector<16x32xf32>
    %149 = vector.broadcast %6 : vector<1x32xf32> to vector<16x32xf32>
    %150 = arith.mulf %148, %149 : vector<16x32xf32>
    %151 = vector.broadcast %7 : vector<1x32xf32> to vector<16x32xf32>
    %152 = arith.addf %150, %151 : vector<16x32xf32>
    %cst_58 = arith.constant dense<0.000000e+00> : vector<16x64xf32>
    %153 = tpu.matmul %152, %12, %cst_58 {dimension_numbers = #tpu.dot_dimension_numbers<[1], [0], [0], [1], [0, 0, 1, 1], [], []>} : vector<16x32xf32>, vector<32x64xf32>, vector<16x64xf32> -> vector<16x64xf32>
    %154 = vector.broadcast %13 : vector<1x64xf32> to vector<16x64xf32>
    %155 = arith.addf %153, %154 : vector<16x64xf32>
    %cst_59 = arith.constant 0.000000e+00 : f32
    %156 = vector.broadcast %cst_59 : f32 to vector<16x64xf32>
    %157 = arith.maximumf %155, %156 : vector<16x64xf32>
    %cst_60 = arith.constant dense<0.000000e+00> : vector<16x32xf32>
    %158 = tpu.matmul %157, %14, %cst_60 {dimension_numbers = #tpu.dot_dimension_numbers<[1], [0], [0], [1], [0, 0, 1, 1], [], []>} : vector<16x64xf32>, vector<64x32xf32>, vector<16x32xf32> -> vector<16x32xf32>
    %159 = arith.addf %130, %158 : vector<16x32xf32>
    %160 = vector.broadcast %15 : vector<1x32xf32> to vector<16x32xf32>
    %161 = arith.addf %159, %160 : vector<16x32xf32>
    %cst_61 = arith.constant dense<0.000000e+00> : vector<16xf32>
    %162 = vector.multi_reduction <add>, %161, %cst_61 [1] : vector<16x32xf32> to vector<16xf32>
    %163 = vector.shape_cast %162 : vector<16xf32> to vector<16x1xf32>
    %cst_62 = arith.constant 3.200000e+01 : f32
    %164 = vector.broadcast %cst_62 : f32 to vector<16x1xf32>
    %165 = arith.divf %163, %164 : vector<16x1xf32>
    %166 = vector.broadcast %165 : vector<16x1xf32> to vector<16x32xf32>
    %167 = arith.subf %161, %166 : vector<16x32xf32>
    %168 = arith.mulf %167, %167 : vector<16x32xf32>
    %cst_63 = arith.constant dense<0.000000e+00> : vector<16xf32>
    %169 = vector.multi_reduction <add>, %168, %cst_63 [1] : vector<16x32xf32> to vector<16xf32>
    %170 = vector.shape_cast %169 : vector<16xf32> to vector<16x1xf32>
    %cst_64 = arith.constant 3.200000e+01 : f32
    %171 = vector.broadcast %cst_64 : f32 to vector<16x1xf32>
    %172 = arith.divf %170, %171 : vector<16x1xf32>
    %173 = vector.broadcast %165 : vector<16x1xf32> to vector<16x32xf32>
    %174 = arith.subf %161, %173 : vector<16x32xf32>
    %cst_65 = arith.constant 9.99999974E-6 : f32
    %175 = vector.broadcast %cst_65 : f32 to vector<16x1xf32>
    %176 = arith.addf %172, %175 : vector<16x1xf32>
    %177 = math.rsqrt %176 : vector<16x1xf32>
    %178 = vector.broadcast %177 : vector<16x1xf32> to vector<16x32xf32>
    %179 = arith.mulf %174, %178 : vector<16x32xf32>
    %180 = vector.broadcast %4 : vector<1x32xf32> to vector<16x32xf32>
    %181 = arith.mulf %179, %180 : vector<16x32xf32>
    %182 = vector.broadcast %5 : vector<1x32xf32> to vector<16x32xf32>
    %183 = arith.addf %181, %182 : vector<16x32xf32>
    %cst_66 = arith.constant dense<0.000000e+00> : vector<16x96xf32>
    %184 = tpu.matmul %183, %8, %cst_66 {dimension_numbers = #tpu.dot_dimension_numbers<[1], [0], [0], [1], [0, 0, 1, 1], [], []>} : vector<16x32xf32>, vector<32x96xf32>, vector<16x96xf32> -> vector<16x96xf32>
    %185 = vector.broadcast %9 : vector<1x96xf32> to vector<16x96xf32>
    %186 = arith.addf %184, %185 : vector<16x96xf32>
    %187 = vector.extract_strided_slice %186 {offsets = [0, 0], sizes = [16, 32], strides = [1, 1]} : vector<16x96xf32> to vector<16x32xf32>
    %188 = vector.shape_cast %187 : vector<16x32xf32> to vector<2x8x32xf32>
    %189 = vector.extract_strided_slice %186 {offsets = [0, 32], sizes = [16, 32], strides = [1, 1]} : vector<16x96xf32> to vector<16x32xf32>
    %190 = vector.shape_cast %189 : vector<16x32xf32> to vector<2x8x32xf32>
    %191 = vector.extract_strided_slice %186 {offsets = [0, 64], sizes = [16, 32], strides = [1, 1]} : vector<16x96xf32> to vector<16x32xf32>
    %192 = vector.shape_cast %191 : vector<16x32xf32> to vector<2x8x32xf32>
    %cst_67 = arith.constant 0.000000e+00 : f32
    %193 = vector.broadcast %cst_67 : f32 to vector<16x32xf32>
    %194 = vector.extract_strided_slice %188 {offsets = [0, 0, 0], sizes = [2, 8, 8], strides = [1, 1, 1]} : vector<2x8x32xf32> to vector<2x8x8xf32>
    %195 = vector.extract_strided_slice %190 {offsets = [0, 0, 0], sizes = [2, 8, 8], strides = [1, 1, 1]} : vector<2x8x32xf32> to vector<2x8x8xf32>
    %196 = vector.extract_strided_slice %192 {offsets = [0, 0, 0], sizes = [2, 8, 8], strides = [1, 1, 1]} : vector<2x8x32xf32> to vector<2x8x8xf32>
    "tpu.trace_start"() <{level = 10 : i32, message = "bqd,bkd->bqk"}> : () -> ()
    %cst_68 = arith.constant dense<0.000000e+00> : vector<2x8x8xf32>
    %197 = tpu.matmul %194, %195, %cst_68 {dimension_numbers = #tpu.dot_dimension_numbers<[2], [2], [1], [1], [0, 0, 0, 1, 1, 1], [0], [0]>} : vector<2x8x8xf32>, vector<2x8x8xf32>, vector<2x8x8xf32> -> vector<2x8x8xf32>
    "tpu.trace_stop"() : () -> ()
    %198 = arith.addf %197, %3 : vector<2x8x8xf32>
    %cst_69 = arith.constant dense<0xFF800000> : vector<2x8xf32>
    %199 = vector.multi_reduction <maximumf>, %198, %cst_69 [2] : vector<2x8x8xf32> to vector<2x8xf32>
    %200 = vector.shape_cast %199 : vector<2x8xf32> to vector<2x8x1xf32>
    %201 = vector.broadcast %200 : vector<2x8x1xf32> to vector<2x8x8xf32>
    %202 = arith.subf %198, %201 : vector<2x8x8xf32>
    %203 = math.exp %202 : vector<2x8x8xf32>
    %cst_70 = arith.constant dense<0.000000e+00> : vector<2x8xf32>
    %204 = vector.multi_reduction <add>, %203, %cst_70 [2] : vector<2x8x8xf32> to vector<2x8xf32>
    %205 = vector.shape_cast %204 : vector<2x8xf32> to vector<2x8x1xf32>
    %206 = tpu.reciprocal %205 {approx = true} : vector<2x8x1xf32> -> vector<2x8x1xf32>
    %207 = vector.broadcast %206 : vector<2x8x1xf32> to vector<2x8x8xf32>
    %208 = arith.mulf %203, %207 : vector<2x8x8xf32>
    "tpu.trace_start"() <{level = 10 : i32, message = "bqk,bkd->bqd"}> : () -> ()
    %cst_71 = arith.constant dense<0.000000e+00> : vector<2x8x8xf32>
    %209 = tpu.matmul %208, %196, %cst_71 {dimension_numbers = #tpu.dot_dimension_numbers<[2], [1], [1], [2], [0, 0, 0, 1, 1, 2], [0], [0]>} : vector<2x8x8xf32>, vector<2x8x8xf32>, vector<2x8x8xf32> -> vector<2x8x8xf32>
    "tpu.trace_stop"() : () -> ()
    %210 = vector.shape_cast %209 : vector<2x8x8xf32> to vector<16x8xf32>
    %211 = vector.extract_strided_slice %10 {offsets = [0, 0], sizes = [8, 32], strides = [1, 1]} : vector<32x32xf32> to vector<8x32xf32>
    %cst_72 = arith.constant dense<0.000000e+00> : vector<16x32xf32>
    %212 = tpu.matmul %210, %211, %cst_72 {dimension_numbers = #tpu.dot_dimension_numbers<[1], [0], [0], [1], [0, 0, 1, 1], [], []>} : vector<16x8xf32>, vector<8x32xf32>, vector<16x32xf32> -> vector<16x32xf32>
    %213 = arith.addf %193, %212 : vector<16x32xf32>
    %214 = vector.extract_strided_slice %188 {offsets = [0, 0, 8], sizes = [2, 8, 8], strides = [1, 1, 1]} : vector<2x8x32xf32> to vector<2x8x8xf32>
    %215 = vector.extract_strided_slice %190 {offsets = [0, 0, 8], sizes = [2, 8, 8], strides = [1, 1, 1]} : vector<2x8x32xf32> to vector<2x8x8xf32>
    %216 = vector.extract_strided_slice %192 {offsets = [0, 0, 8], sizes = [2, 8, 8], strides = [1, 1, 1]} : vector<2x8x32xf32> to vector<2x8x8xf32>
    "tpu.trace_start"() <{level = 10 : i32, message = "bqd,bkd->bqk"}> : () -> ()
    %cst_73 = arith.constant dense<0.000000e+00> : vector<2x8x8xf32>
    %217 = tpu.matmul %214, %215, %cst_73 {dimension_numbers = #tpu.dot_dimension_numbers<[2], [2], [1], [1], [0, 0, 0, 1, 1, 1], [0], [0]>} : vector<2x8x8xf32>, vector<2x8x8xf32>, vector<2x8x8xf32> -> vector<2x8x8xf32>
    "tpu.trace_stop"() : () -> ()
    %218 = arith.addf %217, %3 : vector<2x8x8xf32>
    %cst_74 = arith.constant dense<0xFF800000> : vector<2x8xf32>
    %219 = vector.multi_reduction <maximumf>, %218, %cst_74 [2] : vector<2x8x8xf32> to vector<2x8xf32>
    %220 = vector.shape_cast %219 : vector<2x8xf32> to vector<2x8x1xf32>
    %221 = vector.broadcast %220 : vector<2x8x1xf32> to vector<2x8x8xf32>
    %222 = arith.subf %218, %221 : vector<2x8x8xf32>
    %223 = math.exp %222 : vector<2x8x8xf32>
    %cst_75 = arith.constant dense<0.000000e+00> : vector<2x8xf32>
    %224 = vector.multi_reduction <add>, %223, %cst_75 [2] : vector<2x8x8xf32> to vector<2x8xf32>
    %225 = vector.shape_cast %224 : vector<2x8xf32> to vector<2x8x1xf32>
    %226 = tpu.reciprocal %225 {approx = true} : vector<2x8x1xf32> -> vector<2x8x1xf32>
    %227 = vector.broadcast %226 : vector<2x8x1xf32> to vector<2x8x8xf32>
    %228 = arith.mulf %223, %227 : vector<2x8x8xf32>
    "tpu.trace_start"() <{level = 10 : i32, message = "bqk,bkd->bqd"}> : () -> ()
    %cst_76 = arith.constant dense<0.000000e+00> : vector<2x8x8xf32>
    %229 = tpu.matmul %228, %216, %cst_76 {dimension_numbers = #tpu.dot_dimension_numbers<[2], [1], [1], [2], [0, 0, 0, 1, 1, 2], [0], [0]>} : vector<2x8x8xf32>, vector<2x8x8xf32>, vector<2x8x8xf32> -> vector<2x8x8xf32>
    "tpu.trace_stop"() : () -> ()
    %230 = vector.shape_cast %229 : vector<2x8x8xf32> to vector<16x8xf32>
    %231 = vector.extract_strided_slice %10 {offsets = [8, 0], sizes = [8, 32], strides = [1, 1]} : vector<32x32xf32> to vector<8x32xf32>
    %cst_77 = arith.constant dense<0.000000e+00> : vector<16x32xf32>
    %232 = tpu.matmul %230, %231, %cst_77 {dimension_numbers = #tpu.dot_dimension_numbers<[1], [0], [0], [1], [0, 0, 1, 1], [], []>} : vector<16x8xf32>, vector<8x32xf32>, vector<16x32xf32> -> vector<16x32xf32>
    %233 = arith.addf %213, %232 : vector<16x32xf32>
    %234 = vector.extract_strided_slice %188 {offsets = [0, 0, 16], sizes = [2, 8, 8], strides = [1, 1, 1]} : vector<2x8x32xf32> to vector<2x8x8xf32>
    %235 = vector.extract_strided_slice %190 {offsets = [0, 0, 16], sizes = [2, 8, 8], strides = [1, 1, 1]} : vector<2x8x32xf32> to vector<2x8x8xf32>
    %236 = vector.extract_strided_slice %192 {offsets = [0, 0, 16], sizes = [2, 8, 8], strides = [1, 1, 1]} : vector<2x8x32xf32> to vector<2x8x8xf32>
    "tpu.trace_start"() <{level = 10 : i32, message = "bqd,bkd->bqk"}> : () -> ()
    %cst_78 = arith.constant dense<0.000000e+00> : vector<2x8x8xf32>
    %237 = tpu.matmul %234, %235, %cst_78 {dimension_numbers = #tpu.dot_dimension_numbers<[2], [2], [1], [1], [0, 0, 0, 1, 1, 1], [0], [0]>} : vector<2x8x8xf32>, vector<2x8x8xf32>, vector<2x8x8xf32> -> vector<2x8x8xf32>
    "tpu.trace_stop"() : () -> ()
    %238 = arith.addf %237, %3 : vector<2x8x8xf32>
    %cst_79 = arith.constant dense<0xFF800000> : vector<2x8xf32>
    %239 = vector.multi_reduction <maximumf>, %238, %cst_79 [2] : vector<2x8x8xf32> to vector<2x8xf32>
    %240 = vector.shape_cast %239 : vector<2x8xf32> to vector<2x8x1xf32>
    %241 = vector.broadcast %240 : vector<2x8x1xf32> to vector<2x8x8xf32>
    %242 = arith.subf %238, %241 : vector<2x8x8xf32>
    %243 = math.exp %242 : vector<2x8x8xf32>
    %cst_80 = arith.constant dense<0.000000e+00> : vector<2x8xf32>
    %244 = vector.multi_reduction <add>, %243, %cst_80 [2] : vector<2x8x8xf32> to vector<2x8xf32>
    %245 = vector.shape_cast %244 : vector<2x8xf32> to vector<2x8x1xf32>
    %246 = tpu.reciprocal %245 {approx = true} : vector<2x8x1xf32> -> vector<2x8x1xf32>
    %247 = vector.broadcast %246 : vector<2x8x1xf32> to vector<2x8x8xf32>
    %248 = arith.mulf %243, %247 : vector<2x8x8xf32>
    "tpu.trace_start"() <{level = 10 : i32, message = "bqk,bkd->bqd"}> : () -> ()
    %cst_81 = arith.constant dense<0.000000e+00> : vector<2x8x8xf32>
    %249 = tpu.matmul %248, %236, %cst_81 {dimension_numbers = #tpu.dot_dimension_numbers<[2], [1], [1], [2], [0, 0, 0, 1, 1, 2], [0], [0]>} : vector<2x8x8xf32>, vector<2x8x8xf32>, vector<2x8x8xf32> -> vector<2x8x8xf32>
    "tpu.trace_stop"() : () -> ()
    %250 = vector.shape_cast %249 : vector<2x8x8xf32> to vector<16x8xf32>
    %251 = vector.extract_strided_slice %10 {offsets = [16, 0], sizes = [8, 32], strides = [1, 1]} : vector<32x32xf32> to vector<8x32xf32>
    %cst_82 = arith.constant dense<0.000000e+00> : vector<16x32xf32>
    %252 = tpu.matmul %250, %251, %cst_82 {dimension_numbers = #tpu.dot_dimension_numbers<[1], [0], [0], [1], [0, 0, 1, 1], [], []>} : vector<16x8xf32>, vector<8x32xf32>, vector<16x32xf32> -> vector<16x32xf32>
    %253 = arith.addf %233, %252 : vector<16x32xf32>
    %254 = vector.extract_strided_slice %188 {offsets = [0, 0, 24], sizes = [2, 8, 8], strides = [1, 1, 1]} : vector<2x8x32xf32> to vector<2x8x8xf32>
    %255 = vector.extract_strided_slice %190 {offsets = [0, 0, 24], sizes = [2, 8, 8], strides = [1, 1, 1]} : vector<2x8x32xf32> to vector<2x8x8xf32>
    %256 = vector.extract_strided_slice %192 {offsets = [0, 0, 24], sizes = [2, 8, 8], strides = [1, 1, 1]} : vector<2x8x32xf32> to vector<2x8x8xf32>
    "tpu.trace_start"() <{level = 10 : i32, message = "bqd,bkd->bqk"}> : () -> ()
    %cst_83 = arith.constant dense<0.000000e+00> : vector<2x8x8xf32>
    %257 = tpu.matmul %254, %255, %cst_83 {dimension_numbers = #tpu.dot_dimension_numbers<[2], [2], [1], [1], [0, 0, 0, 1, 1, 1], [0], [0]>} : vector<2x8x8xf32>, vector<2x8x8xf32>, vector<2x8x8xf32> -> vector<2x8x8xf32>
    "tpu.trace_stop"() : () -> ()
    %258 = arith.addf %257, %3 : vector<2x8x8xf32>
    %cst_84 = arith.constant dense<0xFF800000> : vector<2x8xf32>
    %259 = vector.multi_reduction <maximumf>, %258, %cst_84 [2] : vector<2x8x8xf32> to vector<2x8xf32>
    %260 = vector.shape_cast %259 : vector<2x8xf32> to vector<2x8x1xf32>
    %261 = vector.broadcast %260 : vector<2x8x1xf32> to vector<2x8x8xf32>
    %262 = arith.subf %258, %261 : vector<2x8x8xf32>
    %263 = math.exp %262 : vector<2x8x8xf32>
    %cst_85 = arith.constant dense<0.000000e+00> : vector<2x8xf32>
    %264 = vector.multi_reduction <add>, %263, %cst_85 [2] : vector<2x8x8xf32> to vector<2x8xf32>
    %265 = vector.shape_cast %264 : vector<2x8xf32> to vector<2x8x1xf32>
    %266 = tpu.reciprocal %265 {approx = true} : vector<2x8x1xf32> -> vector<2x8x1xf32>
    %267 = vector.broadcast %266 : vector<2x8x1xf32> to vector<2x8x8xf32>
    %268 = arith.mulf %263, %267 : vector<2x8x8xf32>
    "tpu.trace_start"() <{level = 10 : i32, message = "bqk,bkd->bqd"}> : () -> ()
    %cst_86 = arith.constant dense<0.000000e+00> : vector<2x8x8xf32>
    %269 = tpu.matmul %268, %256, %cst_86 {dimension_numbers = #tpu.dot_dimension_numbers<[2], [1], [1], [2], [0, 0, 0, 1, 1, 2], [0], [0]>} : vector<2x8x8xf32>, vector<2x8x8xf32>, vector<2x8x8xf32> -> vector<2x8x8xf32>
    "tpu.trace_stop"() : () -> ()
    %270 = vector.shape_cast %269 : vector<2x8x8xf32> to vector<16x8xf32>
    %271 = vector.extract_strided_slice %10 {offsets = [24, 0], sizes = [8, 32], strides = [1, 1]} : vector<32x32xf32> to vector<8x32xf32>
    %cst_87 = arith.constant dense<0.000000e+00> : vector<16x32xf32>
    %272 = tpu.matmul %270, %271, %cst_87 {dimension_numbers = #tpu.dot_dimension_numbers<[1], [0], [0], [1], [0, 0, 1, 1], [], []>} : vector<16x8xf32>, vector<8x32xf32>, vector<16x32xf32> -> vector<16x32xf32>
    %273 = arith.addf %253, %272 : vector<16x32xf32>
    %274 = arith.addf %161, %273 : vector<16x32xf32>
    %275 = vector.broadcast %11 : vector<1x32xf32> to vector<16x32xf32>
    %276 = arith.addf %274, %275 : vector<16x32xf32>
    %cst_88 = arith.constant dense<0.000000e+00> : vector<16xf32>
    %277 = vector.multi_reduction <add>, %276, %cst_88 [1] : vector<16x32xf32> to vector<16xf32>
    %278 = vector.shape_cast %277 : vector<16xf32> to vector<16x1xf32>
    %cst_89 = arith.constant 3.200000e+01 : f32
    %279 = vector.broadcast %cst_89 : f32 to vector<16x1xf32>
    %280 = arith.divf %278, %279 : vector<16x1xf32>
    %281 = vector.broadcast %280 : vector<16x1xf32> to vector<16x32xf32>
    %282 = arith.subf %276, %281 : vector<16x32xf32>
    %283 = arith.mulf %282, %282 : vector<16x32xf32>
    %cst_90 = arith.constant dense<0.000000e+00> : vector<16xf32>
    %284 = vector.multi_reduction <add>, %283, %cst_90 [1] : vector<16x32xf32> to vector<16xf32>
    %285 = vector.shape_cast %284 : vector<16xf32> to vector<16x1xf32>
    %cst_91 = arith.constant 3.200000e+01 : f32
    %286 = vector.broadcast %cst_91 : f32 to vector<16x1xf32>
    %287 = arith.divf %285, %286 : vector<16x1xf32>
    %288 = vector.broadcast %280 : vector<16x1xf32> to vector<16x32xf32>
    %289 = arith.subf %276, %288 : vector<16x32xf32>
    %cst_92 = arith.constant 9.99999974E-6 : f32
    %290 = vector.broadcast %cst_92 : f32 to vector<16x1xf32>
    %291 = arith.addf %287, %290 : vector<16x1xf32>
    %292 = math.rsqrt %291 : vector<16x1xf32>
    %293 = vector.broadcast %292 : vector<16x1xf32> to vector<16x32xf32>
    %294 = arith.mulf %289, %293 : vector<16x32xf32>
    %295 = vector.broadcast %6 : vector<1x32xf32> to vector<16x32xf32>
    %296 = arith.mulf %294, %295 : vector<16x32xf32>
    %297 = vector.broadcast %7 : vector<1x32xf32> to vector<16x32xf32>
    %298 = arith.addf %296, %297 : vector<16x32xf32>
    %cst_93 = arith.constant dense<0.000000e+00> : vector<16x64xf32>
    %299 = tpu.matmul %298, %12, %cst_93 {dimension_numbers = #tpu.dot_dimension_numbers<[1], [0], [0], [1], [0, 0, 1, 1], [], []>} : vector<16x32xf32>, vector<32x64xf32>, vector<16x64xf32> -> vector<16x64xf32>
    %300 = vector.broadcast %13 : vector<1x64xf32> to vector<16x64xf32>
    %301 = arith.addf %299, %300 : vector<16x64xf32>
    %cst_94 = arith.constant 0.000000e+00 : f32
    %302 = vector.broadcast %cst_94 : f32 to vector<16x64xf32>
    %303 = arith.maximumf %301, %302 : vector<16x64xf32>
    %cst_95 = arith.constant dense<0.000000e+00> : vector<16x32xf32>
    %304 = tpu.matmul %303, %14, %cst_95 {dimension_numbers = #tpu.dot_dimension_numbers<[1], [0], [0], [1], [0, 0, 1, 1], [], []>} : vector<16x64xf32>, vector<64x32xf32>, vector<16x32xf32> -> vector<16x32xf32>
    %305 = arith.addf %276, %304 : vector<16x32xf32>
    %306 = vector.broadcast %15 : vector<1x32xf32> to vector<16x32xf32>
    %307 = arith.addf %305, %306 : vector<16x32xf32>
    %c0_96 = arith.constant 0 : index
    %c0_97 = arith.constant 0 : index
    %308 = vector.load %arg12[%c0_96, %c0_97] : memref<2x32xf32, #tpu.memory_space<vmem>>, vector<1x32xf32>
    %c1_98 = arith.constant 1 : index
    %c0_99 = arith.constant 0 : index
    %309 = vector.load %arg12[%c1_98, %c0_99] : memref<2x32xf32, #tpu.memory_space<vmem>>, vector<1x32xf32>
    %cst_100 = arith.constant dense<0.000000e+00> : vector<16xf32>
    %310 = vector.multi_reduction <add>, %307, %cst_100 [1] : vector<16x32xf32> to vector<16xf32>
    %311 = vector.shape_cast %310 : vector<16xf32> to vector<16x1xf32>
    %cst_101 = arith.constant 3.200000e+01 : f32
    %312 = vector.broadcast %cst_101 : f32 to vector<16x1xf32>
    %313 = arith.divf %311, %312 : vector<16x1xf32>
    %314 = vector.broadcast %313 : vector<16x1xf32> to vector<16x32xf32>
    %315 = arith.subf %307, %314 : vector<16x32xf32>
    %316 = arith.mulf %315, %315 : vector<16x32xf32>
    %cst_102 = arith.constant dense<0.000000e+00> : vector<16xf32>
    %317 = vector.multi_reduction <add>, %316, %cst_102 [1] : vector<16x32xf32> to vector<16xf32>
    %318 = vector.shape_cast %317 : vector<16xf32> to vector<16x1xf32>
    %cst_103 = arith.constant 3.200000e+01 : f32
    %319 = vector.broadcast %cst_103 : f32 to vector<16x1xf32>
    %320 = arith.divf %318, %319 : vector<16x1xf32>
    %321 = vector.broadcast %313 : vector<16x1xf32> to vector<16x32xf32>
    %322 = arith.subf %307, %321 : vector<16x32xf32>
    %cst_104 = arith.constant 9.99999974E-6 : f32
    %323 = vector.broadcast %cst_104 : f32 to vector<16x1xf32>
    %324 = arith.addf %320, %323 : vector<16x1xf32>
    %325 = math.rsqrt %324 : vector<16x1xf32>
    %326 = vector.broadcast %325 : vector<16x1xf32> to vector<16x32xf32>
    %327 = arith.mulf %322, %326 : vector<16x32xf32>
    %328 = vector.broadcast %308 : vector<1x32xf32> to vector<16x32xf32>
    %329 = arith.mulf %327, %328 : vector<16x32xf32>
    %330 = vector.broadcast %309 : vector<1x32xf32> to vector<16x32xf32>
    %331 = arith.addf %329, %330 : vector<16x32xf32>
    %c0_105 = arith.constant 0 : index
    %c0_106 = arith.constant 0 : index
    %332 = vector.load %arg13[%c0_105, %c0_106] : memref<16x32xf32, #tpu.memory_space<vmem>>, vector<16x32xf32>
    tpu.vector_store %arg13[%c0_105, %c0_106], %331 {strides = array<i32>} : memref<16x32xf32, #tpu.memory_space<vmem>>, vector<16x32xf32>,
    return
  }
}

</mosaic_0001>

<bundles_post_ra>
// kernel: tpu_custom_call.1
= control target key start
LH: loop header
LB: loop body
LE: loop exit
PB: predicated region body
PF: predicated region fallthrough
CT: control target
= control target key end

     0   :  { %18 = vsyncpa [#allocation3], 0  ;;  %s5777_s0 = inlined_call_operand.hbm [shape: f32[16,32], index: 0, kind: input, shape index: {}]   ;;  %s5778_s1 = inlined_call_operand.hbm [shape: f32[16,32], index: 1, kind: input, shape index: {}]   ;;  %s5779_s2 = inlined_call_operand.hbm [shape: f32[2,8,8], index: 2, kind: input, shape index: {}]   ;;  %s5780_s3 = inlined_call_operand.vmem [shape: f32[4,32], index: 3, kind: input, shape index: {}]   ;;  %s5781_s4 = inlined_call_operand.vmem [shape: f32[32,96], index: 4, kind: input, shape index: {}]   ;;  %s5782_s5 = inlined_call_operand.vmem [shape: f32[1,96], index: 5, kind: input, shape index: {}]   ;;  %s5783_s6 = inlined_call_operand.vmem [shape: f32[32,32], index: 6, kind: input, shape index: {}]   ;;  %s5784_s7 = inlined_call_operand.hbm [shape: f32[1,32], index: 7, kind: input, shape index: {}]   ;;  %s5785_s8 = inlined_call_operand.vmem [shape: f32[32,64], index: 8, kind: input, shape index: {}]   ;;  %s5786_s9 = inlined_call_operand.hbm [shape: f32[1,64], index: 9, kind: input, shape index: {}]   ;;  %s5787_s10 = inlined_call_operand.vmem [shape: f32[64,32], index: 10, kind: input, shape index: {}]   ;;  %s5788_s11 = inlined_call_operand.vmem [shape: f32[1,32], index: 11, kind: input, shape index: {}]   ;;  %s5789_s12 = inlined_call_operand.vmem [shape: f32[2,32], index: 12, kind: input, shape index: {}]   ;;  %s5790_s13 = inlined_call_operand.hbm [shape: f32[16,32], index: 13, kind: output, shape index: {}]  }
   0x1   :  { %19 = vsyncpa [#allocation6], 0 }
   0x2   :  { %20 = vsyncpa [#allocation9], 0 }
   0x3   :  { %21 = vsyncpa [#allocation4], 0  ;;  %s4991_s25 = smov [#allocation5]   ;;  %s4992_s27 = smov [#allocation8]  }
   0x4   :  { %s39_s26 = sshll.u32 %s4991_s25, 4  ;;  %s72_s28 = sshll.u32 %s4992_s27, 4  ;;  %s40_s26 = int_to_ptr.vmem [resolvable:$true] %s39_s26  ;;  %s5082_s28 = int_to_ptr.vmem [resolvable:$true] %s72_s28 }
   0x5   :  { %s4851_s14 = scalar_lea.hbm %s5778_s1, 256 }
   0x6   :  { %p4852_p0 = scmp.ne.s32.totalorder %s5778_s1, %s4851_s14  ;;  %p4855_p1 = scmp.lt.u32.totalorder %s4851_s14, %s5778_s1 }
   0x8   :  { %p4857_p2 = pnand %p4855_p1, %p4852_p0 }
   0xa   :  { %4860 = shalt.err (!%p4857_p2)
}
   0xb   :  { %s4861_s19 = scalar_lea.vmem %s40_s26, 256  ;;  %p4866_p4 = scmp.lt.s32.totalorder %s40_s26, %s40_s26 }
   0xc   :  { %p4862_p3 = scmp.ne.s32.totalorder %s40_s26, %s4861_s19  ;;  %p4867_p5 = scmp.lt.s32.totalorder %s4861_s19, %s4861_s19 }
   0xe   :  { %p4868_p6 = por %p4867_p5, %p4866_p4 }
  0x10   :  { %p4869_p7 = pnand %p4868_p6, %p4862_p3 }
  0x12   :  { %4872 = shalt.err (!%p4869_p7)
}
  0x13   :  { %s4993_s20 = smov 128   ;;  %s4994_s21 = smov 8  }
  0x14   :  { %45 = dma.hbm_to_vmem [thread:$0]  %s5778_s1, 256, %s40_s26, [#allocation6], %s4993_s20, %s4993_s20, %s4994_s21  }
  0x15   :  { %s4873_s27 = scalar_lea.hbm %s5784_s7, 16 }
  0x16   :  { %p4874_p8 = scmp.ne.s32.totalorder %s5784_s7, %s4873_s27  ;;  %p4877_p9 = scmp.lt.u32.totalorder %s4873_s27, %s5784_s7 }
  0x18   :  { %p4879_p10 = pnand %p4877_p9, %p4874_p8 }
  0x1a   :  { %4882 = shalt.err (!%p4879_p10)
}
  0x1b   :  { %s4883_s16 = scalar_lea.vmem %s5082_s28, 16  ;;  %s4887_s1 = scalar_lea.vmem %s5082_s28, 32 }
  0x1c   :  { %p4884_p11 = scmp.ne.s32.totalorder %s5082_s28, %s4883_s16  ;;  %p4888_p12 = scmp.lt.s32.totalorder %s5082_s28, %s5082_s28 }
  0x1d   :  { %p4889_p13 = scmp.lt.s32.totalorder %s4887_s1, %s4883_s16 }
  0x1f   :  { %p4890_p0 = por %p4889_p13, %p4888_p12 }
  0x21   :  { %p4891_p1 = pnand %p4890_p0, %p4884_p11 }
  0x23   :  { %4894 = shalt.err (!%p4891_p1)
}
  0x24   :  { %75 = dma.hbm_to_vmem [thread:$0]  %s5784_s7, 16, %s5082_s28, [#allocation9]  }
  0x25   :  { %s4995_s18 = smov [#allocation2]   ;;  %s4996_s22 = smov [#allocation7]  }
  0x26   :  { %s27_s19 = sshll.u32 %s4995_s18, 4  ;;  %s51_s23 = sshll.u32 %s4996_s22, 4  ;;  %s28_s19 = int_to_ptr.vmem [resolvable:$true] %s27_s19  ;;  %s5117_s23 = int_to_ptr.vmem [resolvable:$true] %s51_s23 }
  0x27   :  { %s4895_s27 = scalar_lea.hbm %s5777_s0, 256 }
  0x28   :  { %p4896_p2 = scmp.ne.s32.totalorder %s5777_s0, %s4895_s27  ;;  %p4899_p3 = scmp.lt.u32.totalorder %s4895_s27, %s5777_s0 }
  0x2a   :  { %p4901_p4 = pnand %p4899_p3, %p4896_p2 }
  0x2c   :  { %4904 = shalt.err (!%p4901_p4)
}
  0x2d   :  { %s4905_s7 = scalar_lea.vmem %s28_s19, 256  ;;  %p4910_p6 = scmp.lt.s32.totalorder %s28_s19, %s28_s19 }
  0x2e   :  { %p4906_p5 = scmp.ne.s32.totalorder %s28_s19, %s4905_s7  ;;  %p4911_p7 = scmp.lt.s32.totalorder %s4905_s7, %s4905_s7 }
  0x30   :  { %p4912_p8 = por %p4911_p7, %p4910_p6 }
  0x32   :  { %p4913_p9 = pnand %p4912_p8, %p4906_p5 }
  0x34   :  { %4916 = shalt.err (!%p4913_p9)
}
  0x35   :  { %33 = dma.hbm_to_vmem [thread:$0]  %s5777_s0, 256, %s28_s19, [#allocation3], %s4993_s20, %s4993_s20, %s4994_s21  }
  0x36   :  { %s4917_s17 = scalar_lea.hbm %s5779_s2, 256 }
  0x37   :  { %p4918_p10 = scmp.ne.s32.totalorder %s5779_s2, %s4917_s17  ;;  %p4921_p11 = scmp.lt.u32.totalorder %s4917_s17, %s5779_s2 }
  0x39   :  { %p4923_p12 = pnand %p4921_p11, %p4918_p10 }
  0x3b   :  { %4926 = shalt.err (!%p4923_p12)
}
  0x3c   :  { %s4927_s27 = scalar_lea.vmem %s5117_s23, 256  ;;  %p4932_p0 = scmp.lt.s32.totalorder %s5117_s23, %s5117_s23 }
  0x3d   :  { %p4928_p13 = scmp.ne.s32.totalorder %s5117_s23, %s4927_s27  ;;  %p4933_p1 = scmp.lt.s32.totalorder %s4927_s27, %s4927_s27 }
  0x3f   :  { %p4934_p2 = por %p4933_p1, %p4932_p0 }
  0x41   :  { %p4935_p3 = pnand %p4934_p2, %p4928_p13 }
  0x43   :  { %4938 = shalt.err (!%p4935_p3)
}
  0x44   :  { %57 = dma.hbm_to_vmem [thread:$0]  %s5779_s2, 256, %s5117_s23, [#allocation6], %s4993_s20, %s4993_s20, %s4994_s21  }
  0x45   :  { %s4997_s29 = smov [#allocation10]   ;;  %s4939_s7 = scalar_lea.hbm %s5786_s9, 16 }
  0x46   :  { %s84_s30 = sshll.u32 %s4997_s29, 4  ;;  %p4940_p4 = scmp.ne.s32.totalorder %s5786_s9, %s4939_s7  ;;  %s85_s30 = int_to_ptr.vmem [resolvable:$true] %s84_s30 }
  0x47   :  { %p4943_p5 = scmp.lt.u32.totalorder %s4939_s7, %s5786_s9 }
  0x49   :  { %p4945_p6 = pnand %p4943_p5, %p4940_p4 }
  0x4b   :  { %4948 = shalt.err (!%p4945_p6)
}
  0x4c   :  { %s4949_s17 = scalar_lea.vmem %s85_s30, 16  ;;  %s4953_s2 = scalar_lea.vmem %s85_s30, 32 }
  0x4d   :  { %p4950_p7 = scmp.ne.s32.totalorder %s85_s30, %s4949_s17  ;;  %p4954_p8 = scmp.lt.s32.totalorder %s85_s30, %s85_s30 }
  0x4e   :  { %p4955_p9 = scmp.lt.s32.totalorder %s4953_s2, %s4949_s17 }
  0x50   :  { %p4956_p10 = por %p4955_p9, %p4954_p8 }
  0x52   :  { %p4957_p11 = pnand %p4956_p10, %p4950_p7 }
  0x54   :  { %4960 = shalt.err (!%p4957_p11)
}
  0x55   :  { %87 = dma.hbm_to_vmem [thread:$0]  %s5786_s9, 16, %s85_s30, [#allocation9]  }
  0x56   :  { %4983 = dma.done.wait [#allocation3], 256  }
  0x57   :  { %4984 = vsyncadd [#allocation3], 4294967040 }
  0x58   :  { %4985 = dma.done.wait [#allocation6], 512  }
  0x59   :  { %4986 = vsyncadd [#allocation6], 4294966784 }
  0x5a   :  { %4987 = dma.done.wait [#allocation9], 32  }
  0x5b   :  { %4988 = vsyncadd [#allocation9], 4294967264  ;;  %v109_v0 = vld [vmem:[#allocation2] sm:$0xff]  ;;  %v111_v1 = vld [vmem:[#allocation5] sm:$0xff]  ;;  %vm145_vm0 = vcmask 261120   ;;  %v4998_v40 = vmov 0.0  }
  0x5c   :  { %v110_v2 = vld [vmem:[#allocation2 + $0x8] sm:$0xff]  ;;  %v5166_v3 = vadd.f32 %v111_v1, %v109_v0  ;;  %v112_v4 = vld [vmem:[#allocation5 + $0x8] sm:$0xff]  ;;  %v121_v18 = vld [vmem:[%s5781_s4] sm:$0xff]  ;;  %4407 = vmatprep.subr.mxu0 %v4998_v40  ;;  %vm4999_vm1 = vmmov 0   ;;  %s5000_s16 = smov 96   ;;  %vm275_vm2 = vcmask 64512  }
  0x5d   :  { %v5168_v5 = vadd.f32 %v112_v4, %v110_v2  ;;  %v122_v19 = vld [vmem:[%s5781_s4 + $0x8] sm:$0xff]  ;;  %v123_v20 = vld [vmem:[%s5781_s4 + $0x10] sm:$0xff]  ;;  %v124_v22 = vld [vmem:[%s5781_s4 + $0x18] sm:$0xff]  ;;  %4409 = vmatprep.mubr.msk.f32.mxu0 %vm4999_vm1, %v4998_v40  ;;  %s5002_s1 = smov 120   ;;  %s5003_s26 = smov 80   ;;  %vm2056_vm3 = vcmask 523264  }
  0x5e   :  { %v146_v6 = vsel %vm145_vm0, %v5166_v3, 0.0  ;;  %v5187_v21 = vpack.c.bf16 %v122_v19, %v121_v18  ;;  %v5192_v23 = vpack.c.bf16 %v124_v22, %v123_v20  ;;  %v5201_v31 = vld [vmem:[%s5780_s3] ss:$0 sm:$0xff]  ;;  %v5206_v33 = vld [vmem:[%s5780_s3 + $0x1] ss:$0 sm:$0xff]  ;;  %v5247_v50 = vld [vmem:[#allocation7 + $0x8] sm:$0xff] }
  0x5f   :  { %147 = vadd.xlane.f32.xlu0 %v146_v6  ;;  %v149_v7 = vsel %vm145_vm0, %v5168_v5, 0.0  ;;  %v5223_v41 = vld [vmem:[%s5782_s5] ss:$0 sm:$0xff]  ;;  %s5001_s5 = smov 88   ;;  %s5004_s17 = smov 64  }
  0x60   :  { %4669 = vmatprep.subr.bf16.mxu1 %v5187_v21  ;;  %v5255_v55 = vld [vmem:[#allocation7] sm:$0xff]  ;;  %s5005_s2 = smov 56   ;;  %s5006_s23 = smov 112  }
  0x61   :  { %4671 = vmatpush3.bf16.msra.mxu1 %v5187_v21  ;;  %s5007_s18 = smov 48   ;;  %s5008_s9 = smov 72  }
  0x62   :  { %4673 = vmatprep.subr.bf16.mxu1 %v5192_v23  ;;  %s5009_s22 = smov 104   ;;  %s5010_s4 = smov 40  }
  0x63   :  { %150 = vadd.xlane.f32.xlu0 %v149_v7 }
  0x65   :  { %4675 = vmatpush3.bf16.msra.mxu1 %v5192_v23 }
  0x66   :  { %4397 = vmatprep.subr.mxu1 %v4998_v40 }
  0xec   :  { %v148_v8 = vpop.xlane.xlu0 %147 }
  0xed   :  { %v153_v9 = vmul.f32 0.03125, %v148_v8 }
  0xef   :  { %v155_v10 = vsub.f32 %v5166_v3, %v153_v9 }
  0xf0   :  { %v151_v11 = vpop.xlane.xlu0 %150 }
  0xf1   :  { %v154_v12 = vmul.f32 0.03125, %v151_v11  ;;  %v157_v13 = vmul.f32 %v155_v10, %v155_v10 }
  0xf3   :  { %v156_v14 = vsub.f32 %v5168_v5, %v154_v12  ;;  %v159_v15 = vsel %vm145_vm0, %v157_v13, 0.0 }
  0xf4   :  { %160 = vadd.xlane.f32.xlu1 %v159_v15 }
  0xf5   :  { %v158_v16 = vmul.f32 %v156_v14, %v156_v14 }
  0xf7   :  { %v162_v17 = vsel %vm145_vm0, %v158_v16, 0.0 }
  0xf8   :  { %163 = vadd.xlane.f32.xlu1 %v162_v17 }
 0x181   :  { %v161_v24 = vpop.xlane.xlu1 %160 }
 0x182   :  { %v165_v25 = vmul.f32 0.03125, %v161_v24 }
 0x184   :  { %v167_v26 = vadd.f32 1e-05, %v165_v25 }
 0x185   :  { %v164_v27 = vpop.xlane.xlu1 %163 }
 0x186   :  { %4765 = vrsqrt.f32 %v167_v26  ;;  %v166_v28 = vmul.f32 0.03125, %v164_v27 }
 0x188   :  { %v168_v29 = vadd.f32 1e-05, %v166_v28 }
 0x18a   :  { %4767 = vrsqrt.f32 %v168_v29 }
 0x190   :  { %v4766_v30 = vpop.eup %4765 }
 0x191   :  { %v171_v32 = vmul.f32 %v4766_v30, %v155_v10 }
 0x193   :  { %v177_v34 = vmul.f32 %v5201_v31, %v171_v32 }
 0x194   :  { %v4768_v35 = vpop.eup %4767 }
 0x195   :  { %v183_v36 = vadd.f32 %v5206_v33, %v177_v34  ;;  %v172_v37 = vmul.f32 %v4768_v35, %v156_v14 }
 0x197   :  { %4394 = vmatprep.mubr.msk.f32.mxu1 %vm145_vm0, %v183_v36  ;;  %v178_v38 = vmul.f32 %v5201_v31, %v172_v37 }
 0x199   :  { %v184_v39 = vadd.f32 %v5206_v33, %v178_v38 }
 0x19b   :  { %4395 = vmatmul.mubr.msk.f32.vlgmr.msra.gmra.mrb[0].mxu1 %vm145_vm0, %v184_v39 }
 0x19c   :  { %4399 = vmatprep.mubr.msk.f32.mxu1 %vm4999_vm1, %v4998_v40 }
 0x26e   :  { %v4396_v42 = vpop.f32.mrb[0].mxu1 }
 0x26f   :  { %v5226_v43 = vadd.f32 %v4396_v42, %v5223_v41  ;;  %v263_v44 = vpop.f32.mrb[1].mxu1 }
 0x270   :  { %v5229_v45 = vadd.f32 %v5223_v41, %v263_v44 }
 0x271   :  { %351 = vrot.lane.b32.xlu1 %v5226_v43, %s5000_s16 }
 0x272   :  { %273 = vrot.lane.b32.xlu0 %v5229_v45, %s5000_s16 }
 0x2e3   :  { %v352_v47 = vpop.permute.xlu1 %351 }
 0x2e4   :  { %v274_v46 = vpop.permute.xlu0 %273 }
 0x2e5   :  { %4398 = vmatpush3.xpose.msk.msra.mxu1 %vm275_vm2, %v274_v46 }
 0x2e6   :  { %4402 = vmatprep.subr.mxu1 %v4998_v40 }
 0x2e8   :  { %4400 = vmatmul.mubr.msk.f32.vlgmr.msra.gmra.mrb[2].mxu1 %vm275_vm2, %v5229_v45 }
 0x2e9   :  { %4403 = vmatpush3.xpose.msk.msra.mxu1 %vm275_vm2, %v352_v47  ;;  %4404 = vmatprep.mubr.msk.f32.mxu1 %vm4999_vm1, %v4998_v40 }
 0x2ea   :  { %4412 = vmatprep.subr.mxu1 %v4998_v40 }
 0x2ec   :  { %4405 = vmatmul.mubr.msk.f32.vlgmr.msra.gmra.mrb[4].mxu1 %vm275_vm2, %v5226_v43 }
 0x2ed   :  { %4414 = vmatprep.mubr.msk.f32.mxu1 %vm4999_vm1, %v4998_v40 }
 0x3bb   :  { %v346_v48 = vpop.f32.mrb[2].mxu1 }
 0x3bc   :  { %v4401_v49 = vpop.f32.mrb[3].mxu1  ;;  %v347_v56 = vadd.f32 %v346_v48, %v5255_v55 }
 0x3be   :  { %v427_v57 = vsel %vm275_vm2, %v347_v56, -inf }
 0x3bf   :  { %v423_v51 = vpop.f32.mrb[4].mxu1 }
 0x3c0   :  { %v424_v52 = vadd.f32 %v423_v51, %v5247_v50  ;;  %v4406_v53 = vpop.f32.mrb[5].mxu1 }
 0x3c2   :  { %v430_v54 = vsel %vm275_vm2, %v424_v52, -inf }
 0x3c3   :  { %431 = vmax.xlane.f32.xlu1 %v430_v54 }
 0x3d4   :  { %681 = vrot.lane.b32.xlu1 %v5226_v43, %s5001_s5 }
 0x3d8   :  { %679 = vrot.lane.b32.xlu1 %v5226_v43, %s5002_s1 }
 0x3fc   :  { %428 = vmax.xlane.f32.xlu1 %v427_v57 }
 0x40d   :  { %603 = vrot.lane.b32.xlu1 %v5229_v45, %s5001_s5 }
 0x411   :  { %601 = vrot.lane.b32.xlu1 %v5229_v45, %s5002_s1 }
 0x415   :  { %1095 = vrot.lane.b32.xlu1 %v5229_v45, %s5003_s26 }
 0x450   :  { %v432_v58 = vpop.xlane.xlu1 %431 }
 0x451   :  { %v434_v59 = vsub.f32 %v424_v52, %v432_v58 }
 0x453   :  { %v437_v60 = vmul.f32 1.442695, %v434_v59 }
 0x454   :  { %v682_v63 = vpop.permute.xlu1 %681 }
 0x455   :  { %4769 = vpow2.f32 %v437_v60 }
 0x458   :  { %v680_v0 = vpop.permute.xlu1 %679 }
 0x45f   :  { %v4770_v61 = vpop.eup %4769 }
 0x460   :  { %v442_v62 = vsel %vm275_vm2, %v4770_v61, 0.0 }
 0x461   :  { %443 = vadd.xlane.f32.xlu0 %v442_v62 }
 0x477   :  { %525 = vrot.lane.b32.xlu0 %v5226_v43, %s5004_s17 }
 0x489   :  { %v429_v1 = vpop.xlane.xlu1 %428 }
 0x48a   :  { %v433_v2 = vsub.f32 %v347_v56, %v429_v1 }
 0x48c   :  { %v435_v4 = vmul.f32 1.442695, %v433_v2 }
 0x48d   :  { %v604_v15 = vpop.permute.xlu1 %603 }
 0x48e   :  { %4771 = vpow2.f32 %v435_v4 }
 0x491   :  { %v602_v17 = vpop.permute.xlu1 %601 }
 0x495   :  { %v1096_v42 = vpop.permute.xlu1 %1095 }
 0x498   :  { %v4772_v6 = vpop.eup %4771 }
 0x499   :  { %v439_v7 = vsel %vm275_vm2, %v4772_v6, 0.0 }
 0x49a   :  { %440 = vadd.xlane.f32.xlu0 %v439_v7 }
 0x4b0   :  { %449 = vrot.lane.b32.xlu0 %v5229_v45, %s5004_s17 }
 0x4ee   :  { %v444_v8 = vpop.xlane.xlu0 %443 }
 0x4ef   :  { %4773 = vrcp.f32 %v444_v8 }
 0x4f2   :  { %v526_v9 = vpop.permute.xlu0 %525 }
 0x4f3   :  { %4413 = vmatpush3.msra.mxu1 %v526_v9 }
 0x4f4   :  { %4422 = vmatprep.subr.mxu1 %v4998_v40 }
 0x4f9   :  { %v4774_v10 = vpop.eup %4773 }
 0x4fa   :  { %v448_v11 = vmul.f32 %v4774_v10, %v4770_v61 }
 0x4fc   :  { %4415 = vmatmul.mubr.msk.f32.vlgmr.msra.gmra.mrb[6].mxu1 %vm275_vm2, %v448_v11  ;;  %v5340_v11 = vld [vmem:[%s5783_s6 + $0x8] sm:$0xff] }
 0x4fd   :  { %4423 = vmatpush3.xpose.msk.msra.mxu1 %vm275_vm2, %v682_v63  ;;  %4424 = vmatprep.mubr.msk.f32.mxu1 %vm4999_vm1, %v4998_v40 }
 0x4fe   :  { %4432 = vmatprep.subr.mxu1 %v4998_v40 }
 0x500   :  { %4425 = vmatmul.mubr.msk.f32.vlgmr.msra.gmra.mrb[8].mxu1 %vm275_vm2, %v680_v0 }
 0x501   :  { %4434 = vmatprep.mubr.msk.f32.mxu1 %vm4999_vm1, %v4998_v40 }
 0x527   :  { %v441_v12 = vpop.xlane.xlu0 %440 }
 0x528   :  { %4775 = vrcp.f32 %v441_v12  ;;  %v5347_v12 = vld [vmem:[%s5783_s6] sm:$0xff] }
 0x52b   :  { %v450_v13 = vpop.permute.xlu0 %449 }
 0x52c   :  { %4408 = vmatpush3.msra.mxu0 %v450_v13 }
 0x52d   :  { %4417 = vmatprep.subr.mxu0 %v4998_v40 }
 0x532   :  { %v4776_v14 = vpop.eup %4775 }
 0x533   :  { %v447_v16 = vmul.f32 %v4776_v14, %v4772_v6 }
 0x535   :  { %4410 = vmatmul.mubr.msk.f32.vlgmr.msra.gmra.mrb[0].mxu0 %vm275_vm2, %v447_v16 }
 0x536   :  { %4418 = vmatpush3.xpose.msk.msra.mxu0 %vm275_vm2, %v604_v15  ;;  %4419 = vmatprep.mubr.msk.f32.mxu0 %vm4999_vm1, %v4998_v40 }
 0x537   :  { %4427 = vmatprep.subr.mxu0 %v4998_v40 }
 0x539   :  { %4420 = vmatmul.mubr.msk.f32.vlgmr.msra.gmra.mrb[2].mxu0 %vm275_vm2, %v602_v17 }
 0x53a   :  { %4429 = vmatprep.mubr.msk.f32.mxu0 %vm4999_vm1, %v4998_v40 }
 0x5cf   :  { %v5289_v18 = vpop.f32.mrb[6].mxu1 }
 0x5d0   :  { %v4416_v19 = vpop.f32.mrb[7].mxu1 }
 0x5d3   :  { %v753_v20 = vpop.f32.mrb[8].mxu1 }
 0x5d4   :  { %v754_v22 = vadd.f32 %v753_v20, %v5247_v50  ;;  %v4426_v24 = vpop.f32.mrb[9].mxu1 }
 0x5d6   :  { %v760_v25 = vsel %vm275_vm2, %v754_v22, -inf }
 0x5d7   :  { %761 = vmax.xlane.f32.xlu0 %v760_v25 }
 0x5ed   :  { %855 = vrot.lane.b32.xlu0 %v5226_v43, %s5005_s2 }
 0x5f1   :  { %1093 = vrot.lane.b32.xlu0 %v5229_v45, %s5006_s23 }
 0x5f5   :  { %1171 = vrot.lane.b32.xlu0 %v5226_v43, %s5006_s23 }
 0x608   :  { %v5299_v26 = vpop.f32.mrb[0].mxu0 }
 0x609   :  { %v4411_v27 = vpop.f32.mrb[1].mxu0 }
 0x60c   :  { %v675_v28 = vpop.f32.mrb[2].mxu0 }
 0x60d   :  { %v4421_v29 = vpop.f32.mrb[3].mxu0  ;;  %v676_v38 = vadd.f32 %v675_v28, %v5255_v55 }
 0x60f   :  { %v757_v39 = vsel %vm275_vm2, %v676_v38, -inf }
 0x664   :  { %v762_v30 = vpop.xlane.xlu0 %761 }
 0x665   :  { %v764_v32 = vsub.f32 %v754_v22, %v762_v30 }
 0x667   :  { %v767_v34 = vmul.f32 1.442695, %v764_v32  ;;  %v5369_v32 = vld [vmem:[%s5783_s6 + $0x10] sm:$0xff] }
 0x668   :  { %v856_v35 = vpop.permute.xlu0 %855 }
 0x669   :  { %4777 = vpow2.f32 %v767_v34  ;;  %4433 = vmatpush3.msra.mxu1 %v856_v35 }
 0x66a   :  { %4447 = vmatprep.subr.mxu1 %v4998_v40 }
 0x66c   :  { %v1094_v48 = vpop.permute.xlu0 %1093 }
 0x670   :  { %v1172_v51 = vpop.permute.xlu0 %1171 }
 0x673   :  { %v4778_v36 = vpop.eup %4777 }
 0x674   :  { %v772_v37 = vsel %vm275_vm2, %v4778_v36, 0.0 }
 0x675   :  { %773 = vadd.xlane.f32.xlu1 %v772_v37 }
 0x686   :  { %1173 = vrot.lane.b32.xlu1 %v5226_v43, %s5003_s26 }
 0x6aa   :  { %758 = vmax.xlane.f32.xlu1 %v757_v39 }
 0x702   :  { %v774_v44 = vpop.xlane.xlu1 %773 }
 0x703   :  { %4779 = vrcp.f32 %v774_v44 }
 0x706   :  { %v1174_v49 = vpop.permute.xlu1 %1173 }
 0x70d   :  { %v4780_v46 = vpop.eup %4779 }
 0x70e   :  { %v778_v47 = vmul.f32 %v4780_v46, %v4778_v36 }
 0x710   :  { %4435 = vmatmul.mubr.msk.f32.vlgmr.msra.gmra.mrb[10].mxu1 %vm275_vm2, %v778_v47 }
 0x711   :  { %4448 = vmatpush3.xpose.msk.msra.mxu1 %vm275_vm2, %v1096_v42  ;;  %4449 = vmatprep.mubr.msk.f32.mxu1 %vm4999_vm1, %v4998_v40 }
 0x712   :  { %4452 = vmatprep.subr.mxu1 %v4998_v40 }
 0x714   :  { %4450 = vmatmul.mubr.msk.f32.vlgmr.msra.gmra.mrb[12].mxu1 %vm275_vm2, %v1094_v48 }
 0x715   :  { %4453 = vmatpush3.xpose.msk.msra.mxu1 %vm275_vm2, %v1174_v49  ;;  %4454 = vmatprep.mubr.msk.f32.mxu1 %vm4999_vm1, %v4998_v40 }
 0x716   :  { %4462 = vmatprep.subr.mxu1 %v4998_v40 }
 0x718   :  { %4455 = vmatmul.mubr.msk.f32.vlgmr.msra.gmra.mrb[14].mxu1 %vm275_vm2, %v1172_v51 }
 0x719   :  { %4464 = vmatprep.mubr.msk.f32.mxu1 %vm4999_vm1, %v4998_v40 }
 0x737   :  { %v759_v52 = vpop.xlane.xlu1 %758 }
 0x738   :  { %v763_v53 = vsub.f32 %v676_v38, %v759_v52 }
 0x73a   :  { %v765_v54 = vmul.f32 1.442695, %v763_v53 }
 0x73c   :  { %4781 = vpow2.f32 %v765_v54 }
 0x746   :  { %v4782_v56 = vpop.eup %4781 }
 0x747   :  { %v769_v57 = vsel %vm275_vm2, %v4782_v56, 0.0 }
 0x748   :  { %770 = vadd.xlane.f32.xlu0 %v769_v57 }
 0x75e   :  { %779 = vrot.lane.b32.xlu0 %v5229_v45, %s5005_s2 }
 0x762   :  { %1347 = vrot.lane.b32.xlu0 %v5226_v43, %s5007_s18 }
 0x766   :  { %1508 = vrot.lane.b32.xlu0 %v5229_v45, %s5008_s9 }
 0x76a   :  { %1586 = vrot.lane.b32.xlu0 %v5226_v43, %s5008_s9 }
 0x76e   :  { %1506 = vrot.lane.b32.xlu0 %v5229_v45, %s5009_s22 }
 0x7d5   :  { %v771_v58 = vpop.xlane.xlu0 %770 }
 0x7d6   :  { %4783 = vrcp.f32 %v771_v58 }
 0x7d9   :  { %v780_v59 = vpop.permute.xlu0 %779 }
 0x7da   :  { %4428 = vmatpush3.msra.mxu0 %v780_v59 }
 0x7db   :  { %4437 = vmatprep.subr.mxu0 %v5340_v11 }
 0x7dd   :  { %v1348_v60 = vpop.permute.xlu0 %1347 }
 0x7de   :  { %4463 = vmatpush3.msra.mxu1 %v1348_v60 }
 0x7df   :  { %4472 = vmatprep.subr.mxu1 %v4998_v40 }
 0x7e0   :  { %v4784_v61 = vpop.eup %4783 }
 0x7e1   :  { %v777_v62 = vmul.f32 %v4784_v61, %v4782_v56  ;;  %v1509_v34 = vpop.permute.xlu0 %1508 }
 0x7e3   :  { %4430 = vmatmul.mubr.msk.f32.vlgmr.msra.gmra.mrb[4].mxu0 %vm275_vm2, %v777_v62  ;;  %v927_v63 = vpop.f32.mrb[10].mxu1 }
 0x7e4   :  { %v4436_v0 = vpop.f32.mrb[11].mxu1  ;;  %4438 = vmatpush3.msra.mxu0 %v5340_v11 }
 0x7e5   :  { %4442 = vmatprep.subr.mxu0 %v5347_v12  ;;  %v1587_v37 = vpop.permute.xlu0 %1586 }
 0x7e7   :  { %v1167_v1 = vpop.f32.mrb[12].mxu1 }
 0x7e8   :  { %v1168_v2 = vadd.f32 %v1167_v1, %v5255_v55  ;;  %v4451_v4 = vpop.f32.mrb[13].mxu1 }
 0x7e9   :  { %v1507_v39 = vpop.permute.xlu0 %1506 }
 0x7ea   :  { %v1249_v6 = vsel %vm275_vm2, %v1168_v2, -inf }
 0x7eb   :  { %1250 = vmax.xlane.f32.xlu1 %v1249_v6  ;;  %v1245_v7 = vpop.f32.mrb[14].mxu1 }
 0x7ec   :  { %v1246_v8 = vadd.f32 %v1245_v7, %v5247_v50  ;;  %v4456_v9 = vpop.f32.mrb[15].mxu1 }
 0x7ee   :  { %v1252_v10 = vsel %vm275_vm2, %v1246_v8, -inf }
 0x7ef   :  { %1253 = vmax.xlane.f32.xlu1 %v1252_v10 }
 0x878   :  { %v1251_v13 = vpop.xlane.xlu1 %1250 }
 0x879   :  { %v1255_v14 = vsub.f32 %v1168_v2, %v1251_v13 }
 0x87b   :  { %v1257_v15 = vmul.f32 1.442695, %v1255_v14 }
 0x87c   :  { %v1254_v16 = vpop.xlane.xlu1 %1253 }
 0x87d   :  { %4785 = vpow2.f32 %v1257_v15  ;;  %v1256_v17 = vsub.f32 %v1246_v8, %v1254_v16  ;;  %v5407_v16 = vld [vmem:[%s5783_s6 + $0x18] sm:$0xff] }
 0x87f   :  { %v1259_v19 = vmul.f32 1.442695, %v1256_v17 }
 0x881   :  { %4787 = vpow2.f32 %v1259_v19 }
 0x887   :  { %v4786_v20 = vpop.eup %4785 }
 0x888   :  { %v1261_v22 = vsel %vm275_vm2, %v4786_v20, 0.0 }
 0x889   :  { %1262 = vadd.xlane.f32.xlu1 %v1261_v22  ;;  %v5413_v22 = vld [vmem:[#allocation8] ss:$0 sm:$0xff] }
 0x88b   :  { %v4788_v24 = vpop.eup %4787 }
 0x88c   :  { %v1264_v25 = vsel %vm275_vm2, %v4788_v24, 0.0 }
 0x88d   :  { %1265 = vadd.xlane.f32.xlu1 %v1264_v25 }
 0x89e   :  { %1271 = vrot.lane.b32.xlu1 %v5229_v45, %s5007_s18 }
 0x8a2   :  { %1584 = vrot.lane.b32.xlu1 %v5226_v43, %s5009_s22 }
 0x8b6   :  { %v851_v27 = vpop.f32.mrb[4].mxu0 }
 0x8b7   :  { %v4431_v28 = vpop.f32.mrb[5].mxu0  ;;  %4439 = vmatprep.mubr.msk.f32.mxu0 %vm275_vm2, %v851_v27 }
 0x8b8   :  { %4440 = vmatmul.mubr.msk.f32.vlgmr.msra.gmra.mrb[6].mxu0 %vm275_vm2, %v927_v63 }
 0x8b9   :  { %4444 = vmatprep.mubr.msk.f32.mxu0 %vm275_vm2, %v5299_v26  ;;  %4443 = vmatpush3.msra.mxu0 %v5347_v12 }
 0x8ba   :  { %4457 = vmatprep.subr.mxu0 %v4998_v40 }
 0x8c0   :  { %4445 = vmatmul.mubr.msk.f32.vlgmr.msra.gmra.mrb[6].mxu0 %vm275_vm2, %v5289_v18 }
 0x8c1   :  { %4459 = vmatprep.mubr.msk.f32.mxu0 %vm4999_vm1, %v4998_v40 }
 0x916   :  { %v1263_v29 = vpop.xlane.xlu1 %1262 }
 0x917   :  { %4789 = vrcp.f32 %v1263_v29 }
 0x91a   :  { %v1266_v30 = vpop.xlane.xlu1 %1265 }
 0x91b   :  { %4791 = vrcp.f32 %v1266_v30 }
 0x91e   :  { %v1272_v26 = vpop.permute.xlu1 %1271 }
 0x91f   :  { %4458 = vmatpush3.msra.mxu0 %v1272_v26 }
 0x920   :  { %4467 = vmatprep.subr.mxu0 %v5369_v32 }
 0x921   :  { %v4790_v35 = vpop.eup %4789 }
 0x922   :  { %v1269_v36 = vmul.f32 %v4790_v35, %v4786_v20  ;;  %v1585_v48 = vpop.permute.xlu1 %1584 }
 0x924   :  { %4460 = vmatmul.mubr.msk.f32.vlgmr.msra.gmra.mrb[8].mxu0 %vm275_vm2, %v1269_v36 }
 0x925   :  { %v4792_v18 = vpop.eup %4791  ;;  %4468 = vmatpush3.msra.mxu0 %v5369_v32 }
 0x926   :  { %v1270_v38 = vmul.f32 %v4792_v18, %v4788_v24  ;;  %4477 = vmatprep.subr.mxu0 %v4998_v40 }
 0x928   :  { %4465 = vmatmul.mubr.msk.f32.vlgmr.msra.gmra.mrb[16].mxu1 %vm275_vm2, %v1270_v38 }
 0x929   :  { %4473 = vmatpush3.xpose.msk.msra.mxu1 %vm275_vm2, %v1509_v34  ;;  %4474 = vmatprep.mubr.msk.f32.mxu1 %vm4999_vm1, %v4998_v40 }
 0x92a   :  { %4482 = vmatprep.subr.mxu1 %v4998_v40 }
 0x92c   :  { %4475 = vmatmul.mubr.msk.f32.vlgmr.msra.gmra.mrb[18].mxu1 %vm275_vm2, %v1507_v39 }
 0x92d   :  { %4484 = vmatprep.mubr.msk.f32.mxu1 %vm4999_vm1, %v4998_v40 }
 0x9f7   :  { %v1343_v42 = vpop.f32.mrb[8].mxu0 }
 0x9f8   :  { %v4461_v44 = vpop.f32.mrb[9].mxu0  ;;  %4469 = vmatprep.mubr.msk.f32.mxu0 %vm275_vm2, %v1343_v42 }
 0x9fb   :  { %v1419_v46 = vpop.f32.mrb[16].mxu1 }
 0x9fc   :  { %v4466_v47 = vpop.f32.mrb[17].mxu1  ;;  %4470 = vmatmul.mubr.msk.f32.vlgmr.msra.gmra.mrb[6].mxu0 %vm275_vm2, %v1419_v46  ;;  %v131_v46 = vld [vmem:[%s5785_s8] sm:$0xff] }
 0x9fd   :  { %4478 = vmatpush3.xpose.msk.msra.mxu0 %vm275_vm2, %v1587_v37  ;;  %4479 = vmatprep.mubr.msk.f32.mxu0 %vm4999_vm1, %v4998_v40  ;;  %v132_v47 = vld [vmem:[%s5785_s8 + $0x8] sm:$0xff] }
 0x9fe   :  { %4487 = vmatprep.subr.mxu0 %v4998_v40 }
 0x9ff   :  { %v1580_v49 = vpop.f32.mrb[18].mxu1 }
 0xa00   :  { %v1581_v51 = vadd.f32 %v1580_v49, %v5255_v55  ;;  %v4476_v52 = vpop.f32.mrb[19].mxu1  ;;  %4480 = vmatmul.mubr.msk.f32.vlgmr.msra.gmra.mrb[10].mxu0 %vm275_vm2, %v1585_v48  ;;  %v5437_v48 = vpack.c.bf16 %v132_v47, %v131_v46  ;;  %v133_v49 = vld [vmem:[%s5785_s8 + $0x10] sm:$0xff] }
 0xa01   :  { %4489 = vmatprep.mubr.msk.f32.mxu0 %vm4999_vm1, %v4998_v40 }
 0xa02   :  { %v1662_v53 = vsel %vm275_vm2, %v1581_v51, -inf }
 0xa03   :  { %1663 = vmax.xlane.f32.xlu0 %v1662_v53  ;;  %v136_v53 = vld [vmem:[%s5787_s10] sm:$0xff] }
 0xa90   :  { %v1664_v54 = vpop.xlane.xlu0 %1663 }
 0xa91   :  { %v1668_v56 = vsub.f32 %v1581_v51, %v1664_v54  ;;  %v134_v51 = vld [vmem:[%s5785_s8 + $0x18] sm:$0xff]  ;;  %v137_v54 = vld [vmem:[%s5787_s10 + $0x8] sm:$0xff] }
 0xa92   :  { %v5446_v52 = vpack.c.bf16 %v134_v51, %v133_v49 }
 0xa93   :  { %v1670_v57 = vmul.f32 1.442695, %v1668_v56  ;;  %v138_v56 = vld [vmem:[%s5787_s10 + $0x10] sm:$0xff] }
 0xa95   :  { %4793 = vpow2.f32 %v1670_v57  ;;  %v5461_v57 = vpack.c.bf16 %v137_v54, %v136_v53 }
 0xa9f   :  { %v4794_v58 = vpop.eup %4793 }
 0xaa0   :  { %v1674_v59 = vsel %vm275_vm2, %v4794_v58, 0.0 }
 0xaa1   :  { %1675 = vadd.xlane.f32.xlu0 %v1674_v59 }
 0xad3   :  { %v1658_v60 = vpop.f32.mrb[10].mxu0 }
 0xad4   :  { %v1659_v61 = vadd.f32 %v1658_v60, %v5247_v50  ;;  %v4481_v62 = vpop.f32.mrb[11].mxu0  ;;  %v140_v60 = vld [vmem:[%s5787_s10 + $0x20] sm:$0xff] }
 0xad6   :  { %v1665_v63 = vsel %vm275_vm2, %v1659_v61, -inf }
 0xad7   :  { %1666 = vmax.xlane.f32.xlu1 %v1665_v63 }
 0xae8   :  { %1760 = vrot.lane.b32.xlu1 %v5226_v43, %s5010_s4 }
 0xb2e   :  { %v1676_v8 = vpop.xlane.xlu0 %1675 }
 0xb64   :  { %v1667_v0 = vpop.xlane.xlu1 %1666 }
 0xb65   :  { %v1669_v1 = vsub.f32 %v1659_v61, %v1667_v0  ;;  %v141_v61 = vld [vmem:[%s5787_s10 + $0x28] sm:$0xff] }
 0xb66   :  { %v5477_v62 = vpack.c.bf16 %v141_v61, %v140_v60 }
 0xb67   :  { %v1672_v2 = vmul.f32 1.442695, %v1669_v1 }
 0xb68   :  { %v1761_v4 = vpop.permute.xlu1 %1760 }
 0xb69   :  { %4795 = vpow2.f32 %v1672_v2  ;;  %4488 = vmatpush3.msra.mxu0 %v1761_v4 }
 0xb6a   :  { %4797 = vrcp.f32 %v1676_v8  ;;  %4492 = vmatprep.subr.mxu0 %v5407_v16  ;;  %v5485_v8 = vld [vmem:[%s5780_s3 + $0x2] ss:$0 sm:$0xff] }
 0xb73   :  { %v4796_v6 = vpop.eup %4795 }
 0xb74   :  { %v1677_v7 = vsel %vm275_vm2, %v4796_v6, 0.0  ;;  %v4798_v10 = vpop.eup %4797 }
 0xb75   :  { %1678 = vadd.xlane.f32.xlu0 %v1677_v7  ;;  %v1682_v13 = vmul.f32 %v4798_v10, %v4794_v58  ;;  %v139_v58 = vld [vmem:[%s5787_s10 + $0x18] sm:$0xff] }
 0xb76   :  { %v5466_v59 = vpack.c.bf16 %v139_v58, %v138_v56 }
 0xb8b   :  { %1684 = vrot.lane.b32.xlu0 %v5229_v45, %s5010_s4 }
 0xc02   :  { %v1679_v9 = vpop.xlane.xlu0 %1678 }
 0xc03   :  { %4799 = vrcp.f32 %v1679_v9 }
 0xc06   :  { %v1685_v43 = vpop.permute.xlu0 %1684 }
 0xc07   :  { %4483 = vmatpush3.msra.mxu1 %v1685_v43  ;;  %v5490_v43 = vld [vmem:[%s5780_s3 + $0x3] ss:$0 sm:$0xff] }
 0xc08   :  { %4485 = vmatmul.mubr.msk.f32.vlgmr.msra.gmra.mrb[20].mxu1 %vm275_vm2, %v1682_v13  ;;  %4677 = vmatprep.subr.bf16.mxu1 %v5437_v48 }
 0xc09   :  { %4679 = vmatpush3.bf16.msra.mxu1 %v5437_v48 }
 0xc0a   :  { %4681 = vmatprep.subr.bf16.mxu1 %v5446_v52 }
 0xc0d   :  { %v4800_v14 = vpop.eup %4799  ;;  %4683 = vmatpush3.bf16.msra.mxu1 %v5446_v52 }
 0xc0e   :  { %v1683_v15 = vmul.f32 %v4800_v14, %v4796_v6  ;;  %4701 = vmatprep.subr.bf16.mxu1 %v5187_v21 }
 0xc10   :  { %4490 = vmatmul.mubr.msk.f32.vlgmr.msra.gmra.mrb[12].mxu0 %vm275_vm2, %v1683_v15 }
 0xc11   :  { %4493 = vmatpush3.msra.mxu0 %v5407_v16 }
 0xc12   :  { %4685 = vmatprep.subr.bf16.mxu0 %v5461_v57 }
 0xcdb   :  { %v1756_v45 = vpop.f32.mrb[20].mxu1 }
 0xcdc   :  { %v4486_v17 = vpop.f32.mrb[21].mxu1  ;;  %4494 = vmatprep.mubr.msk.f32.mxu0 %vm275_vm2, %v1756_v45 }
 0xce3   :  { %v1832_v19 = vpop.f32.mrb[12].mxu0 }
 0xce4   :  { %v4491_v20 = vpop.f32.mrb[13].mxu0  ;;  %4495 = vmatmul.mubr.msk.f32.vlgmr.msra.gmra.mrb[6].mxu0 %vm275_vm2, %v1832_v19  ;;  %v142_v19 = vld [vmem:[%s5787_s10 + $0x30] sm:$0xff] }
 0xce5   :  { %4687 = vmatpush3.bf16.msra.mxu0 %v5461_v57  ;;  %v143_v20 = vld [vmem:[%s5787_s10 + $0x38] sm:$0xff] }
 0xce6   :  { %4689 = vmatprep.subr.bf16.mxu0 %v5466_v59 }
 0xce9   :  { %4691 = vmatpush3.bf16.msra.mxu0 %v5466_v59 }
 0xcea   :  { %4693 = vmatprep.subr.bf16.mxu0 %v5477_v62 }
 0xced   :  { %4695 = vmatpush3.bf16.msra.mxu0 %v5477_v62 }
 0xdb7   :  { %v4496_v24 = vpop.f32.mrb[6].mxu0 }
 0xdb8   :  { %v1920_v25 = vadd.f32 %v4496_v24, %v5168_v5  ;;  %v1908_v27 = vpop.f32.mrb[7].mxu0  ;;  %v5508_v24 = vpack.c.bf16 %v143_v20, %v142_v19 }
 0xdb9   :  { %v1919_v28 = vadd.f32 %v1908_v27, %v5166_v3 }
 0xdba   :  { %v5418_v29 = vadd.f32 %v5413_v22, %v1920_v25  ;;  %4697 = vmatprep.subr.bf16.mxu0 %v5508_v24 }
 0xdbb   :  { %v5421_v30 = vadd.f32 %v5413_v22, %v1919_v28  ;;  %4699 = vmatpush3.bf16.msra.mxu0 %v5508_v24 }
 0xdbc   :  { %v1932_v26 = vsel %vm145_vm0, %v5418_v29, 0.0  ;;  %4548 = vmatprep.subr.mxu0 %v4998_v40 }
 0xdbd   :  { %1933 = vadd.xlane.f32.xlu0 %v1932_v26  ;;  %v1929_v34 = vsel %vm145_vm0, %v5421_v30, 0.0 }
 0xdbe   :  { %1930 = vadd.xlane.f32.xlu1 %v1929_v34 }
 0xe4a   :  { %v1934_v35 = vpop.xlane.xlu0 %1933 }
 0xe4b   :  { %v1936_v36 = vmul.f32 0.03125, %v1934_v35  ;;  %v1931_v5 = vpop.xlane.xlu1 %1930  ;;  %v5524_v35 = vld [vmem:[%s5788_s11] ss:$0 sm:$0xff] }
 0xe4c   :  { %v1935_v18 = vmul.f32 0.03125, %v1931_v5 }
 0xe4d   :  { %v1938_v3 = vsub.f32 %v5418_v29, %v1936_v36 }
 0xe4e   :  { %v1937_v37 = vsub.f32 %v5421_v30, %v1935_v18 }
 0xe4f   :  { %v1940_v38 = vmul.f32 %v1938_v3, %v1938_v3 }
 0xe50   :  { %v1939_v39 = vmul.f32 %v1937_v37, %v1937_v37 }
 0xe51   :  { %v1944_v42 = vsel %vm145_vm0, %v1940_v38, 0.0 }
 0xe52   :  { %1945 = vadd.xlane.f32.xlu1 %v1944_v42  ;;  %v1941_v44 = vsel %vm145_vm0, %v1939_v39, 0.0 }
 0xe53   :  { %1942 = vadd.xlane.f32.xlu0 %v1941_v44 }
 0xedf   :  { %v1946_v63 = vpop.xlane.xlu1 %1945 }
 0xee0   :  { %v1948_v0 = vmul.f32 0.03125, %v1946_v63  ;;  %v1943_v1 = vpop.xlane.xlu0 %1942 }
 0xee1   :  { %v1947_v2 = vmul.f32 0.03125, %v1943_v1 }
 0xee2   :  { %v1950_v4 = vadd.f32 1e-05, %v1948_v0 }
 0xee3   :  { %v1949_v6 = vadd.f32 1e-05, %v1947_v2 }
 0xee4   :  { %4801 = vrsqrt.f32 %v1950_v4 }
 0xee5   :  { %4803 = vrsqrt.f32 %v1949_v6 }
 0xeee   :  { %v4802_v7 = vpop.eup %4801 }
 0xeef   :  { %v4804_v9 = vpop.eup %4803  ;;  %v1954_v10 = vmul.f32 %v4802_v7, %v1938_v3 }
 0xef0   :  { %v1953_v13 = vmul.f32 %v4804_v9, %v1937_v37 }
 0xef1   :  { %v1960_v14 = vmul.f32 %v5485_v8, %v1954_v10 }
 0xef2   :  { %v1959_v15 = vmul.f32 %v5485_v8, %v1953_v13 }
 0xef3   :  { %v1966_v17 = vadd.f32 %v5490_v43, %v1960_v14 }
 0xef4   :  { %v1965_v45 = vadd.f32 %v5490_v43, %v1959_v15 }
 0xef6   :  { %4505 = vmatprep.mubr.msk.f32.mxu1 %vm145_vm0, %v1965_v45 }
 0xef7   :  { %4506 = vmatmul.mubr.msk.f32.vlgmr.msra.gmra.mrb[22].mxu1 %vm145_vm0, %v1966_v17 }
 0xef8   :  { %4703 = vmatpush3.bf16.msra.mxu1 %v5187_v21  ;;  %v5513_v21 = vld [vmem:[#allocation10] ss:$0 sm:$0xff] }
 0xef9   :  { %4705 = vmatprep.subr.bf16.mxu1 %v5192_v23 }
 0xefc   :  { %4707 = vmatpush3.bf16.msra.mxu1 %v5192_v23 }
 0xefd   :  { %4538 = vmatprep.subr.mxu1 %v4998_v40 }
 0xfca   :  { %v4507_v23 = vpop.f32.mrb[22].mxu1 }
 0xfcb   :  { %v2051_v25 = vadd.f32 %v4507_v23, %v5513_v21  ;;  %v2045_v27 = vpop.f32.mrb[23].mxu1 }
 0xfcc   :  { %v2046_v28 = vadd.f32 %v5513_v21, %v2045_v27 }
 0xfcd   :  { %v2055_v34 = vmax.f32 %v2051_v25, 0.0 }
 0xfce   :  { %v2054_v26 = vmax.f32 %v2046_v28, 0.0 }
 0xfd0   :  { %4524 = vmatprep.mubr.msk.f32.mxu0 %vm2056_vm3, %v2054_v26 }
 0xfd1   :  { %4525 = vmatmul.mubr.msk.f32.vlgmr.msra.gmra.mrb[14].mxu0 %vm2056_vm3, %v2055_v34 }
 0xfd2   :  { %4550 = vmatprep.mubr.msk.f32.mxu0 %vm4999_vm1, %v4998_v40 }
0x10a4   :  { %v4526_v36 = vpop.f32.mrb[14].mxu0 }
0x10a5   :  { %v2139_v5 = vadd.f32 %v4526_v36, %v5418_v29  ;;  %v2129_v18 = vpop.f32.mrb[15].mxu0 }
0x10a6   :  { %v2138_v3 = vadd.f32 %v2129_v18, %v5421_v30 }
0x10a7   :  { %v5529_v37 = vadd.f32 %v5524_v35, %v2139_v5 }
0x10a8   :  { %v5532_v38 = vadd.f32 %v5524_v35, %v2138_v3 }
0x10a9   :  { %v2151_v39 = vsel %vm145_vm0, %v5529_v37, 0.0 }
0x10aa   :  { %2152 = vadd.xlane.f32.xlu1 %v2151_v39  ;;  %v2148_v42 = vsel %vm145_vm0, %v5532_v38, 0.0 }
0x10ab   :  { %2149 = vadd.xlane.f32.xlu0 %v2148_v42 }
0x1137   :  { %v2153_v44 = vpop.xlane.xlu1 %2152 }
0x1138   :  { %v2155_v46 = vmul.f32 0.03125, %v2153_v44  ;;  %v2150_v29 = vpop.xlane.xlu0 %2149 }
0x1139   :  { %v2154_v47 = vmul.f32 0.03125, %v2150_v29 }
0x113a   :  { %v2157_v30 = vsub.f32 %v5529_v37, %v2155_v46 }
0x113b   :  { %v2156_v49 = vsub.f32 %v5532_v38, %v2154_v47 }
0x113c   :  { %v2159_v51 = vmul.f32 %v2157_v30, %v2157_v30 }
0x113d   :  { %v2158_v53 = vmul.f32 %v2156_v49, %v2156_v49 }
0x113e   :  { %v2163_v54 = vsel %vm145_vm0, %v2159_v51, 0.0 }
0x113f   :  { %2164 = vadd.xlane.f32.xlu1 %v2163_v54  ;;  %v2160_v56 = vsel %vm145_vm0, %v2158_v53, 0.0 }
0x1140   :  { %2161 = vadd.xlane.f32.xlu0 %v2160_v56 }
0x11cc   :  { %v2165_v58 = vpop.xlane.xlu1 %2164 }
0x11cd   :  { %v2167_v60 = vmul.f32 0.03125, %v2165_v58  ;;  %v2162_v61 = vpop.xlane.xlu0 %2161 }
0x11ce   :  { %v2166_v63 = vmul.f32 0.03125, %v2162_v61 }
0x11cf   :  { %v2169_v0 = vadd.f32 1e-05, %v2167_v60 }
0x11d0   :  { %v2168_v1 = vadd.f32 1e-05, %v2166_v63 }
0x11d1   :  { %4805 = vrsqrt.f32 %v2169_v0 }
0x11d2   :  { %4807 = vrsqrt.f32 %v2168_v1 }
0x11db   :  { %v4806_v2 = vpop.eup %4805 }
0x11dc   :  { %v4808_v4 = vpop.eup %4807  ;;  %v2173_v6 = vmul.f32 %v4806_v2, %v2157_v30 }
0x11dd   :  { %v2172_v7 = vmul.f32 %v4808_v4, %v2156_v49 }
0x11de   :  { %v2175_v9 = vmul.f32 %v5201_v31, %v2173_v6 }
0x11df   :  { %v2174_v10 = vmul.f32 %v5201_v31, %v2172_v7 }
0x11e0   :  { %v2177_v14 = vadd.f32 %v5206_v33, %v2175_v9 }
0x11e1   :  { %v2176_v13 = vadd.f32 %v5206_v33, %v2174_v10 }
0x11e3   :  { %4535 = vmatprep.mubr.msk.f32.mxu1 %vm145_vm0, %v2176_v13 }
0x11e4   :  { %4536 = vmatmul.mubr.msk.f32.vlgmr.msra.gmra.mrb[24].mxu1 %vm145_vm0, %v2177_v14 }
0x11e5   :  { %4540 = vmatprep.mubr.msk.f32.mxu1 %vm4999_vm1, %v4998_v40 }
0x12b7   :  { %v4537_v15 = vpop.f32.mrb[24].mxu1 }
0x12b8   :  { %v5551_v45 = vadd.f32 %v4537_v15, %v5223_v41  ;;  %v2250_v17 = vpop.f32.mrb[25].mxu1 }
0x12b9   :  { %v5554_v19 = vadd.f32 %v5223_v41, %v2250_v17 }
0x12ba   :  { %2337 = vrot.lane.b32.xlu1 %v5551_v45, %s5000_s16 }
0x12bb   :  { %2260 = vrot.lane.b32.xlu0 %v5554_v19, %s5000_s16 }
0x132c   :  { %v2338_v33 = vpop.permute.xlu1 %2337 }
0x132d   :  { %v2261_v31 = vpop.permute.xlu0 %2260 }
0x132e   :  { %4539 = vmatpush3.xpose.msk.msra.mxu1 %vm275_vm2, %v2261_v31 }
0x132f   :  { %4543 = vmatprep.subr.mxu1 %v4998_v40 }
0x1331   :  { %4541 = vmatmul.mubr.msk.f32.vlgmr.msra.gmra.mrb[26].mxu1 %vm275_vm2, %v5554_v19 }
0x1332   :  { %4544 = vmatpush3.xpose.msk.msra.mxu1 %vm275_vm2, %v2338_v33  ;;  %4545 = vmatprep.mubr.msk.f32.mxu1 %vm4999_vm1, %v4998_v40 }
0x1333   :  { %4553 = vmatprep.subr.mxu1 %v4998_v40 }
0x1335   :  { %4546 = vmatmul.mubr.msk.f32.vlgmr.msra.gmra.mrb[28].mxu1 %vm275_vm2, %v5551_v45 }
0x1336   :  { %4555 = vmatprep.mubr.msk.f32.mxu1 %vm4999_vm1, %v4998_v40 }
0x1404   :  { %v2332_v41 = vpop.f32.mrb[26].mxu1 }
0x1405   :  { %v4542_v20 = vpop.f32.mrb[27].mxu1  ;;  %v2333_v26 = vadd.f32 %v2332_v41, %v5255_v55 }
0x1407   :  { %v2413_v34 = vsel %vm275_vm2, %v2333_v26, -inf }
0x1408   :  { %v2409_v23 = vpop.f32.mrb[28].mxu1 }
0x1409   :  { %v2410_v25 = vadd.f32 %v2409_v23, %v5247_v50  ;;  %v4547_v27 = vpop.f32.mrb[29].mxu1 }
0x140b   :  { %v2416_v28 = vsel %vm275_vm2, %v2410_v25, -inf }
0x140c   :  { %2417 = vmax.xlane.f32.xlu1 %v2416_v28 }
0x141d   :  { %2667 = vrot.lane.b32.xlu1 %v5551_v45, %s5001_s5 }
0x1421   :  { %2665 = vrot.lane.b32.xlu1 %v5551_v45, %s5002_s1 }
0x1445   :  { %2414 = vmax.xlane.f32.xlu1 %v2413_v34 }
0x1456   :  { %2589 = vrot.lane.b32.xlu1 %v5554_v19, %s5001_s5 }
0x145a   :  { %2587 = vrot.lane.b32.xlu1 %v5554_v19, %s5002_s1 }
0x145e   :  { %3081 = vrot.lane.b32.xlu1 %v5554_v19, %s5003_s26 }
0x1499   :  { %v2418_v36 = vpop.xlane.xlu1 %2417 }
0x149a   :  { %v2420_v5 = vsub.f32 %v2410_v25, %v2418_v36 }
0x149c   :  { %v2423_v18 = vmul.f32 1.442695, %v2420_v5 }
0x149d   :  { %v2668_v42 = vpop.permute.xlu1 %2667 }
0x149e   :  { %4809 = vpow2.f32 %v2423_v18 }
0x14a1   :  { %v2666_v44 = vpop.permute.xlu1 %2665 }
0x14a8   :  { %v4810_v3 = vpop.eup %4809 }
0x14a9   :  { %v2428_v39 = vsel %vm275_vm2, %v4810_v3, 0.0 }
0x14aa   :  { %2429 = vadd.xlane.f32.xlu0 %v2428_v39 }
0x14c0   :  { %2511 = vrot.lane.b32.xlu0 %v5551_v45, %s5004_s17 }
0x14d2   :  { %v2415_v46 = vpop.xlane.xlu1 %2414 }
0x14d3   :  { %v2419_v29 = vsub.f32 %v2333_v26, %v2415_v46 }
0x14d5   :  { %v2421_v47 = vmul.f32 1.442695, %v2419_v29 }
0x14d6   :  { %v2590_v63 = vpop.permute.xlu1 %2589 }
0x14d7   :  { %4811 = vpow2.f32 %v2421_v47 }
0x14da   :  { %v2588_v1 = vpop.permute.xlu1 %2587 }
0x14de   :  { %v3082_v28 = vpop.permute.xlu1 %3081 }
0x14e1   :  { %v4812_v30 = vpop.eup %4811 }
0x14e2   :  { %v2425_v49 = vsel %vm275_vm2, %v4812_v30, 0.0 }
0x14e3   :  { %2426 = vadd.xlane.f32.xlu0 %v2425_v49 }
0x14f9   :  { %2435 = vrot.lane.b32.xlu0 %v5554_v19, %s5004_s17 }
0x1537   :  { %v2430_v51 = vpop.xlane.xlu0 %2429 }
0x1538   :  { %4813 = vrcp.f32 %v2430_v51 }
0x153b   :  { %v2512_v53 = vpop.permute.xlu0 %2511 }
0x153c   :  { %4554 = vmatpush3.msra.mxu1 %v2512_v53 }
0x153d   :  { %4563 = vmatprep.subr.mxu1 %v4998_v40 }
0x1542   :  { %v4814_v54 = vpop.eup %4813 }
0x1543   :  { %v2434_v56 = vmul.f32 %v4814_v54, %v4810_v3 }
0x1545   :  { %4556 = vmatmul.mubr.msk.f32.vlgmr.msra.gmra.mrb[30].mxu1 %vm275_vm2, %v2434_v56 }
0x1546   :  { %4564 = vmatpush3.xpose.msk.msra.mxu1 %vm275_vm2, %v2668_v42  ;;  %4565 = vmatprep.mubr.msk.f32.mxu1 %vm4999_vm1, %v4998_v40 }
0x1547   :  { %4573 = vmatprep.subr.mxu1 %v4998_v40 }
0x1549   :  { %4566 = vmatmul.mubr.msk.f32.vlgmr.msra.gmra.mrb[32].mxu1 %vm275_vm2, %v2666_v44 }
0x154a   :  { %4575 = vmatprep.mubr.msk.f32.mxu1 %vm4999_vm1, %v4998_v40 }
0x1570   :  { %v2427_v58 = vpop.xlane.xlu0 %2426 }
0x1571   :  { %4815 = vrcp.f32 %v2427_v58  ;;  %v5657_v58 = vld [vmem:[#allocation7] sm:$0xff] }
0x1574   :  { %v2436_v60 = vpop.permute.xlu0 %2435 }
0x1575   :  { %4549 = vmatpush3.msra.mxu0 %v2436_v60 }
0x1576   :  { %4558 = vmatprep.subr.mxu0 %v4998_v40 }
0x157b   :  { %v4816_v61 = vpop.eup %4815 }
0x157c   :  { %v2433_v0 = vmul.f32 %v4816_v61, %v4812_v30 }
0x157e   :  { %4551 = vmatmul.mubr.msk.f32.vlgmr.msra.gmra.mrb[16].mxu0 %vm275_vm2, %v2433_v0 }
0x157f   :  { %4559 = vmatpush3.xpose.msk.msra.mxu0 %vm275_vm2, %v2590_v63  ;;  %4560 = vmatprep.mubr.msk.f32.mxu0 %vm4999_vm1, %v4998_v40 }
0x1580   :  { %4568 = vmatprep.subr.mxu0 %v4998_v40 }
0x1582   :  { %4561 = vmatmul.mubr.msk.f32.vlgmr.msra.gmra.mrb[18].mxu0 %vm275_vm2, %v2588_v1  ;;  %v5661_v1 = vld [vmem:[#allocation7 + $0x8] sm:$0xff] }
0x1583   :  { %4570 = vmatprep.mubr.msk.f32.mxu0 %vm4999_vm1, %v4998_v40 }
0x1618   :  { %v5610_v2 = vpop.f32.mrb[30].mxu1 }
0x1619   :  { %v4557_v4 = vpop.f32.mrb[31].mxu1 }
0x161c   :  { %v2739_v6 = vpop.f32.mrb[32].mxu1 }
0x161d   :  { %v2740_v7 = vadd.f32 %v2739_v6, %v5247_v50  ;;  %v4567_v9 = vpop.f32.mrb[33].mxu1 }
0x161f   :  { %v2746_v10 = vsel %vm275_vm2, %v2740_v7, -inf }
0x1620   :  { %2747 = vmax.xlane.f32.xlu0 %v2746_v10 }
0x1636   :  { %2841 = vrot.lane.b32.xlu0 %v5551_v45, %s5005_s2 }
0x163a   :  { %3079 = vrot.lane.b32.xlu0 %v5554_v19, %s5006_s23 }
0x163e   :  { %3157 = vrot.lane.b32.xlu0 %v5551_v45, %s5006_s23 }
0x1651   :  { %v5620_v13 = vpop.f32.mrb[16].mxu0 }
0x1652   :  { %v4552_v14 = vpop.f32.mrb[17].mxu0 }
0x1655   :  { %v2661_v15 = vpop.f32.mrb[18].mxu0 }
0x1656   :  { %v4562_v17 = vpop.f32.mrb[19].mxu0  ;;  %v2662_v25 = vadd.f32 %v2661_v15, %v5255_v55 }
0x1658   :  { %v2743_v27 = vsel %vm275_vm2, %v2662_v25, -inf }
0x16ad   :  { %v2748_v31 = vpop.xlane.xlu0 %2747 }
0x16ae   :  { %v2750_v50 = vsub.f32 %v2740_v7, %v2748_v31 }
0x16b0   :  { %v2753_v33 = vmul.f32 1.442695, %v2750_v50 }
0x16b1   :  { %v2842_v41 = vpop.permute.xlu0 %2841 }
0x16b2   :  { %4817 = vpow2.f32 %v2753_v33  ;;  %4574 = vmatpush3.msra.mxu1 %v2842_v41 }
0x16b3   :  { %4588 = vmatprep.subr.mxu1 %v4998_v40 }
0x16b5   :  { %v3080_v5 = vpop.permute.xlu0 %3079 }
0x16b9   :  { %v3158_v55 = vpop.permute.xlu0 %3157 }
0x16bc   :  { %v4818_v20 = vpop.eup %4817 }
0x16bd   :  { %v2758_v23 = vsel %vm275_vm2, %v4818_v20, 0.0 }
0x16be   :  { %2759 = vadd.xlane.f32.xlu1 %v2758_v23 }
0x16cf   :  { %3159 = vrot.lane.b32.xlu1 %v5551_v45, %s5003_s26  ;;  %s5011_s26 = smov [#allocation11]  }
0x16d0   :  { %s4154_s17 = sshll.u32 %s5011_s26, 4  ;;  %s4155_s17 = int_to_ptr.vmem [resolvable:$true] %s4154_s17 }
0x16d1   :  { %p4966_p13 = scmp.lt.s32.totalorder %s4155_s17, %s4155_s17 }
0x16f3   :  { %2744 = vmax.xlane.f32.xlu1 %v2743_v27 }
0x174b   :  { %v2760_v26 = vpop.xlane.xlu1 %2759 }
0x174c   :  { %4819 = vrcp.f32 %v2760_v26 }
0x174f   :  { %v3160_v18 = vpop.permute.xlu1 %3159 }
0x1756   :  { %v4820_v34 = vpop.eup %4819 }
0x1757   :  { %v2764_v36 = vmul.f32 %v4820_v34, %v4818_v20 }
0x1759   :  { %4576 = vmatmul.mubr.msk.f32.vlgmr.msra.gmra.mrb[34].mxu1 %vm275_vm2, %v2764_v36 }
0x175a   :  { %4589 = vmatpush3.xpose.msk.msra.mxu1 %vm275_vm2, %v3082_v28  ;;  %4590 = vmatprep.mubr.msk.f32.mxu1 %vm4999_vm1, %v4998_v40 }
0x175b   :  { %4593 = vmatprep.subr.mxu1 %v4998_v40 }
0x175d   :  { %4591 = vmatmul.mubr.msk.f32.vlgmr.msra.gmra.mrb[36].mxu1 %vm275_vm2, %v3080_v5 }
0x175e   :  { %4594 = vmatpush3.xpose.msk.msra.mxu1 %vm275_vm2, %v3160_v18  ;;  %4595 = vmatprep.mubr.msk.f32.mxu1 %vm4999_vm1, %v4998_v40 }
0x175f   :  { %4603 = vmatprep.subr.mxu1 %v4998_v40 }
0x1761   :  { %4596 = vmatmul.mubr.msk.f32.vlgmr.msra.gmra.mrb[38].mxu1 %vm275_vm2, %v3158_v55 }
0x1762   :  { %4605 = vmatprep.mubr.msk.f32.mxu1 %vm4999_vm1, %v4998_v40 }
0x1780   :  { %v2745_v3 = vpop.xlane.xlu1 %2744 }
0x1781   :  { %v2749_v39 = vsub.f32 %v2662_v25, %v2745_v3 }
0x1783   :  { %v2751_v42 = vmul.f32 1.442695, %v2749_v39 }
0x1785   :  { %4821 = vpow2.f32 %v2751_v42 }
0x178f   :  { %v4822_v44 = vpop.eup %4821 }
0x1790   :  { %v2755_v46 = vsel %vm275_vm2, %v4822_v44, 0.0 }
0x1791   :  { %2756 = vadd.xlane.f32.xlu0 %v2755_v46 }
0x17a7   :  { %2765 = vrot.lane.b32.xlu0 %v5554_v19, %s5005_s2  ;;  %s4961_s2 = scalar_lea.vmem %s4155_s17, 256 }
0x17a8   :  { %p4962_p12 = scmp.ne.s32.totalorder %s4155_s17, %s4961_s2  ;;  %p4967_p0 = scmp.lt.s32.totalorder %s4961_s2, %s4961_s2 }
0x17aa   :  { %p4968_p1 = por %p4967_p0, %p4966_p13 }
0x17ab   :  { %3333 = vrot.lane.b32.xlu0 %v5551_v45, %s5007_s18 }
0x17ac   :  { %p4969_p2 = pnand %p4968_p1, %p4962_p12 }
0x17af   :  { %3494 = vrot.lane.b32.xlu0 %v5554_v19, %s5008_s9 }
0x17b3   :  { %3572 = vrot.lane.b32.xlu0 %v5551_v45, %s5008_s9 }
0x17b7   :  { %3492 = vrot.lane.b32.xlu0 %v5554_v19, %s5009_s22 }
0x181e   :  { %v2757_v29 = vpop.xlane.xlu0 %2756 }
0x181f   :  { %4823 = vrcp.f32 %v2757_v29 }
0x1822   :  { %v2766_v47 = vpop.permute.xlu0 %2765 }
0x1823   :  { %4569 = vmatpush3.msra.mxu0 %v2766_v47 }
0x1824   :  { %4578 = vmatprep.subr.mxu0 %v5340_v11 }
0x1826   :  { %v3334_v30 = vpop.permute.xlu0 %3333 }
0x1827   :  { %4604 = vmatpush3.msra.mxu1 %v3334_v30 }
0x1828   :  { %4613 = vmatprep.subr.mxu1 %v4998_v40 }
0x1829   :  { %v4824_v49 = vpop.eup %4823 }
0x182a   :  { %v2763_v51 = vmul.f32 %v4824_v49, %v4822_v44  ;;  %v3495_v26 = vpop.permute.xlu0 %3494 }
0x182c   :  { %4571 = vmatmul.mubr.msk.f32.vlgmr.msra.gmra.mrb[20].mxu0 %vm275_vm2, %v2763_v51  ;;  %v2913_v53 = vpop.f32.mrb[34].mxu1 }
0x182d   :  { %v4577_v54 = vpop.f32.mrb[35].mxu1  ;;  %4579 = vmatpush3.msra.mxu0 %v5340_v11 }
0x182e   :  { %4583 = vmatprep.subr.mxu0 %v5347_v12  ;;  %v3573_v36 = vpop.permute.xlu0 %3572 }
0x1830   :  { %v3153_v56 = vpop.f32.mrb[36].mxu1 }
0x1831   :  { %v3154_v60 = vadd.f32 %v5657_v58, %v3153_v56  ;;  %v4592_v61 = vpop.f32.mrb[37].mxu1 }
0x1832   :  { %v3493_v5 = vpop.permute.xlu0 %3492 }
0x1833   :  { %v3235_v63 = vsel %vm275_vm2, %v3154_v60, -inf }
0x1834   :  { %3236 = vmax.xlane.f32.xlu1 %v3235_v63  ;;  %v3231_v0 = vpop.f32.mrb[38].mxu1 }
0x1835   :  { %v3232_v4 = vadd.f32 %v5661_v1, %v3231_v0  ;;  %v4597_v6 = vpop.f32.mrb[39].mxu1 }
0x1837   :  { %v3238_v7 = vsel %vm275_vm2, %v3232_v4, -inf }
0x1838   :  { %3239 = vmax.xlane.f32.xlu1 %v3238_v7 }
0x18c1   :  { %v3237_v11 = vpop.xlane.xlu1 %3236 }
0x18c2   :  { %v3241_v9 = vsub.f32 %v3154_v60, %v3237_v11 }
0x18c4   :  { %v3243_v10 = vmul.f32 1.442695, %v3241_v9 }
0x18c5   :  { %v3240_v14 = vpop.xlane.xlu1 %3239 }
0x18c6   :  { %4825 = vpow2.f32 %v3243_v10  ;;  %v3242_v15 = vsub.f32 %v3232_v4, %v3240_v14 }
0x18c8   :  { %v3245_v17 = vmul.f32 1.442695, %v3242_v15 }
0x18ca   :  { %4827 = vpow2.f32 %v3245_v17 }
0x18d0   :  { %v4826_v31 = vpop.eup %4825 }
0x18d1   :  { %v3247_v50 = vsel %vm275_vm2, %v4826_v31, 0.0 }
0x18d2   :  { %3248 = vadd.xlane.f32.xlu1 %v3247_v50 }
0x18d4   :  { %v4828_v33 = vpop.eup %4827 }
0x18d5   :  { %v3250_v41 = vsel %vm275_vm2, %v4828_v33, 0.0 }
0x18d6   :  { %3251 = vadd.xlane.f32.xlu1 %v3250_v41 }
0x18e7   :  { %3257 = vrot.lane.b32.xlu1 %v5554_v19, %s5007_s18 }
0x18eb   :  { %3570 = vrot.lane.b32.xlu1 %v5551_v45, %s5009_s22 }
0x18ff   :  { %v2837_v20 = vpop.f32.mrb[20].mxu0 }
0x1900   :  { %v4572_v23 = vpop.f32.mrb[21].mxu0  ;;  %4580 = vmatprep.mubr.msk.f32.mxu0 %vm275_vm2, %v2837_v20 }
0x1901   :  { %4581 = vmatmul.mubr.msk.f32.vlgmr.msra.gmra.mrb[22].mxu0 %vm275_vm2, %v2913_v53 }
0x1902   :  { %4585 = vmatprep.mubr.msk.f32.mxu0 %vm275_vm2, %v5620_v13  ;;  %4584 = vmatpush3.msra.mxu0 %v5347_v12 }
0x1903   :  { %4598 = vmatprep.subr.mxu0 %v4998_v40 }
0x1909   :  { %4586 = vmatmul.mubr.msk.f32.vlgmr.msra.gmra.mrb[22].mxu0 %vm275_vm2, %v5610_v2 }
0x190a   :  { %4600 = vmatprep.mubr.msk.f32.mxu0 %vm4999_vm1, %v4998_v40 }
0x195f   :  { %v3249_v25 = vpop.xlane.xlu1 %3248 }
0x1960   :  { %4829 = vrcp.f32 %v3249_v25 }
0x1963   :  { %v3252_v27 = vpop.xlane.xlu1 %3251 }
0x1964   :  { %4831 = vrcp.f32 %v3252_v27 }
0x1967   :  { %v3258_v28 = vpop.permute.xlu1 %3257 }
0x1968   :  { %4599 = vmatpush3.msra.mxu0 %v3258_v28 }
0x1969   :  { %4608 = vmatprep.subr.mxu0 %v5369_v32 }
0x196a   :  { %v4830_v13 = vpop.eup %4829 }
0x196b   :  { %v3255_v34 = vmul.f32 %v4830_v13, %v4826_v31  ;;  %v3571_v39 = vpop.permute.xlu1 %3570 }
0x196d   :  { %4601 = vmatmul.mubr.msk.f32.vlgmr.msra.gmra.mrb[24].mxu0 %vm275_vm2, %v3255_v34 }
0x196e   :  { %v4832_v12 = vpop.eup %4831  ;;  %4609 = vmatpush3.msra.mxu0 %v5369_v32 }
0x196f   :  { %v3256_v2 = vmul.f32 %v4832_v12, %v4828_v33  ;;  %4618 = vmatprep.subr.mxu0 %v4998_v40 }
0x1971   :  { %4606 = vmatmul.mubr.msk.f32.vlgmr.msra.gmra.mrb[40].mxu1 %vm275_vm2, %v3256_v2 }
0x1972   :  { %4614 = vmatpush3.xpose.msk.msra.mxu1 %vm275_vm2, %v3495_v26  ;;  %4615 = vmatprep.mubr.msk.f32.mxu1 %vm4999_vm1, %v4998_v40 }
0x1973   :  { %4623 = vmatprep.subr.mxu1 %v4998_v40 }
0x1975   :  { %4616 = vmatmul.mubr.msk.f32.vlgmr.msra.gmra.mrb[42].mxu1 %vm275_vm2, %v3493_v5 }
0x1976   :  { %4625 = vmatprep.mubr.msk.f32.mxu1 %vm4999_vm1, %v4998_v40 }
0x1a40   :  { %v3329_v18 = vpop.f32.mrb[24].mxu0 }
0x1a41   :  { %v4602_v32 = vpop.f32.mrb[25].mxu0  ;;  %4610 = vmatprep.mubr.msk.f32.mxu0 %vm275_vm2, %v3329_v18 }
0x1a44   :  { %v3405_v55 = vpop.f32.mrb[40].mxu1 }
0x1a45   :  { %v4607_v3 = vpop.f32.mrb[41].mxu1  ;;  %4611 = vmatmul.mubr.msk.f32.vlgmr.msra.gmra.mrb[22].mxu0 %vm275_vm2, %v3405_v55 }
0x1a46   :  { %4619 = vmatpush3.xpose.msk.msra.mxu0 %vm275_vm2, %v3573_v36  ;;  %4620 = vmatprep.mubr.msk.f32.mxu0 %vm4999_vm1, %v4998_v40 }
0x1a47   :  { %4628 = vmatprep.subr.mxu0 %v4998_v40 }
0x1a48   :  { %v3566_v42 = vpop.f32.mrb[42].mxu1 }
0x1a49   :  { %v3567_v44 = vadd.f32 %v5657_v58, %v3566_v42  ;;  %v4617_v46 = vpop.f32.mrb[43].mxu1  ;;  %4621 = vmatmul.mubr.msk.f32.vlgmr.msra.gmra.mrb[26].mxu0 %vm275_vm2, %v3571_v39 }
0x1a4a   :  { %4630 = vmatprep.mubr.msk.f32.mxu0 %vm4999_vm1, %v4998_v40 }
0x1a4b   :  { %v3648_v29 = vsel %vm275_vm2, %v3567_v44, -inf }
0x1a4c   :  { %3649 = vmax.xlane.f32.xlu0 %v3648_v29 }
0x1ad9   :  { %v3650_v47 = vpop.xlane.xlu0 %3649 }
0x1ada   :  { %v3654_v30 = vsub.f32 %v3567_v44, %v3650_v47 }
0x1adc   :  { %v3656_v49 = vmul.f32 1.442695, %v3654_v30 }
0x1ade   :  { %4833 = vpow2.f32 %v3656_v49 }
0x1ae8   :  { %v4834_v51 = vpop.eup %4833 }
0x1ae9   :  { %v3660_v53 = vsel %vm275_vm2, %v4834_v51, 0.0 }
0x1aea   :  { %3661 = vadd.xlane.f32.xlu0 %v3660_v53 }
0x1b1c   :  { %v3644_v54 = vpop.f32.mrb[26].mxu0 }
0x1b1d   :  { %v3645_v56 = vadd.f32 %v5661_v1, %v3644_v54  ;;  %v4622_v58 = vpop.f32.mrb[27].mxu0 }
0x1b1f   :  { %v3651_v60 = vsel %vm275_vm2, %v3645_v56, -inf }
0x1b20   :  { %3652 = vmax.xlane.f32.xlu1 %v3651_v60 }
0x1b31   :  { %3746 = vrot.lane.b32.xlu1 %v5551_v45, %s5010_s4 }
0x1b77   :  { %v3662_v1 = vpop.xlane.xlu0 %3661 }
0x1bad   :  { %v3653_v40 = vpop.xlane.xlu1 %3652 }
0x1bae   :  { %v3655_v61 = vsub.f32 %v3645_v56, %v3653_v40 }
0x1bb0   :  { %v3658_v63 = vmul.f32 1.442695, %v3655_v61 }
0x1bb1   :  { %v3747_v0 = vpop.permute.xlu1 %3746 }
0x1bb2   :  { %4835 = vpow2.f32 %v3658_v63  ;;  %4629 = vmatpush3.msra.mxu0 %v3747_v0 }
0x1bb3   :  { %4633 = vmatprep.subr.mxu0 %v5407_v16  ;;  %4837 = vrcp.f32 %v3662_v1 }
0x1bbc   :  { %v4836_v4 = vpop.eup %4835 }
0x1bbd   :  { %v3663_v6 = vsel %vm275_vm2, %v4836_v4, 0.0  ;;  %v4838_v11 = vpop.eup %4837 }
0x1bbe   :  { %3664 = vadd.xlane.f32.xlu0 %v3663_v6  ;;  %v3668_v45 = vmul.f32 %v4838_v11, %v4834_v51 }
0x1bd4   :  { %3670 = vrot.lane.b32.xlu0 %v5554_v19, %s5010_s4 }
0x1c4b   :  { %v3665_v7 = vpop.xlane.xlu0 %3664 }
0x1c4c   :  { %4839 = vrcp.f32 %v3665_v7 }
0x1c4f   :  { %v3671_v9 = vpop.permute.xlu0 %3670 }
0x1c50   :  { %4624 = vmatpush3.msra.mxu1 %v3671_v9 }
0x1c51   :  { %4626 = vmatmul.mubr.msk.f32.vlgmr.msra.gmra.mrb[44].mxu1 %vm275_vm2, %v3668_v45  ;;  %4709 = vmatprep.subr.bf16.mxu1 %v5437_v48 }
0x1c52   :  { %4711 = vmatpush3.bf16.msra.mxu1 %v5437_v48 }
0x1c53   :  { %4713 = vmatprep.subr.bf16.mxu1 %v5446_v52 }
0x1c56   :  { %v4840_v10 = vpop.eup %4839  ;;  %4715 = vmatpush3.bf16.msra.mxu1 %v5446_v52 }
0x1c57   :  { %v3669_v19 = vmul.f32 %v4840_v10, %v4836_v4 }
0x1c59   :  { %4631 = vmatmul.mubr.msk.f32.vlgmr.msra.gmra.mrb[28].mxu0 %vm275_vm2, %v3669_v19 }
0x1c5a   :  { %4634 = vmatpush3.msra.mxu0 %v5407_v16 }
0x1c5b   :  { %4717 = vmatprep.subr.bf16.mxu0 %v5461_v57 }
0x1d24   :  { %v3742_v14 = vpop.f32.mrb[44].mxu1 }
0x1d25   :  { %v4627_v15 = vpop.f32.mrb[45].mxu1  ;;  %4635 = vmatprep.mubr.msk.f32.mxu0 %vm275_vm2, %v3742_v14 }
0x1d2c   :  { %v3818_v17 = vpop.f32.mrb[28].mxu0 }
0x1d2d   :  { %v4632_v31 = vpop.f32.mrb[29].mxu0  ;;  %4636 = vmatmul.mubr.msk.f32.vlgmr.msra.gmra.mrb[22].mxu0 %vm275_vm2, %v3818_v17 }
0x1d2e   :  { %4719 = vmatpush3.bf16.msra.mxu0 %v5461_v57  ;;  %v4252_v31 = vld [vmem:[%s5789_s12] ss:$0 sm:$0xff] }
0x1d2f   :  { %4721 = vmatprep.subr.bf16.mxu0 %v5466_v59 }
0x1d32   :  { %4723 = vmatpush3.bf16.msra.mxu0 %v5466_v59 }
0x1d33   :  { %4725 = vmatprep.subr.bf16.mxu0 %v5477_v62 }
0x1d36   :  { %4727 = vmatpush3.bf16.msra.mxu0 %v5477_v62 }
0x1d37   :  { %4729 = vmatprep.subr.bf16.mxu0 %v5508_v24 }
0x1d3a   :  { %4731 = vmatpush3.bf16.msra.mxu0 %v5508_v24 }
0x1e00   :  { %v4637_v16 = vpop.f32.mrb[22].mxu0 }
0x1e01   :  { %v3906_v48 = vadd.f32 %v4637_v16, %v5529_v37  ;;  %v3894_v52 = vpop.f32.mrb[23].mxu0 }
0x1e02   :  { %v3905_v50 = vadd.f32 %v3894_v52, %v5532_v38 }
0x1e03   :  { %v3908_v57 = vadd.f32 %v5413_v22, %v3906_v48 }
0x1e04   :  { %v3907_v33 = vadd.f32 %v5413_v22, %v3905_v50  ;;  %v4253_v50 = vld [vmem:[%s5789_s12 + $0x1] ss:$0 sm:$0xff] }
0x1e05   :  { %v3912_v59 = vsel %vm145_vm0, %v3908_v57, 0.0 }
0x1e06   :  { %3913 = vadd.xlane.f32.xlu0 %v3912_v59  ;;  %v3909_v41 = vsel %vm145_vm0, %v3907_v33, 0.0 }
0x1e07   :  { %3910 = vadd.xlane.f32.xlu1 %v3909_v41 }
0x1e93   :  { %v3914_v62 = vpop.xlane.xlu0 %3913 }
0x1e94   :  { %v3916_v20 = vmul.f32 0.03125, %v3914_v62  ;;  %v3911_v23 = vpop.xlane.xlu1 %3910 }
0x1e95   :  { %v3915_v24 = vmul.f32 0.03125, %v3911_v23 }
0x1e96   :  { %v3918_v25 = vsub.f32 %v3908_v57, %v3916_v20 }
0x1e97   :  { %v3917_v27 = vsub.f32 %v3907_v33, %v3915_v24 }
0x1e98   :  { %v3920_v37 = vmul.f32 %v3918_v25, %v3918_v25 }
0x1e99   :  { %v3919_v28 = vmul.f32 %v3917_v27, %v3917_v27 }
0x1e9a   :  { %v3924_v38 = vsel %vm145_vm0, %v3920_v37, 0.0 }
0x1e9b   :  { %3925 = vadd.xlane.f32.xlu1 %v3924_v38  ;;  %v3921_v26 = vsel %vm145_vm0, %v3919_v28, 0.0 }
0x1e9c   :  { %3922 = vadd.xlane.f32.xlu0 %v3921_v26 }
0x1f28   :  { %v3926_v22 = vpop.xlane.xlu1 %3925 }
0x1f29   :  { %v3928_v13 = vmul.f32 0.03125, %v3926_v22  ;;  %v3923_v34 = vpop.xlane.xlu0 %3922 }
0x1f2a   :  { %v3927_v12 = vmul.f32 0.03125, %v3923_v34 }
0x1f2b   :  { %v3930_v36 = vadd.f32 1e-05, %v3928_v13 }
0x1f2c   :  { %v3929_v2 = vadd.f32 1e-05, %v3927_v12 }
0x1f2d   :  { %4841 = vrsqrt.f32 %v3930_v36 }
0x1f2e   :  { %4843 = vrsqrt.f32 %v3929_v2 }
0x1f37   :  { %v4842_v5 = vpop.eup %4841 }
0x1f38   :  { %v4844_v18 = vpop.eup %4843  ;;  %v3934_v32 = vmul.f32 %v4842_v5, %v3918_v25 }
0x1f39   :  { %v3933_v55 = vmul.f32 %v4844_v18, %v3917_v27 }
0x1f3a   :  { %v3936_v3 = vmul.f32 %v5485_v8, %v3934_v32 }
0x1f3b   :  { %v3935_v39 = vmul.f32 %v5485_v8, %v3933_v55 }
0x1f3c   :  { %v3938_v44 = vadd.f32 %v5490_v43, %v3936_v3 }
0x1f3d   :  { %v3937_v42 = vadd.f32 %v5490_v43, %v3935_v39 }
0x1f3f   :  { %4646 = vmatprep.mubr.msk.f32.mxu1 %vm145_vm0, %v3937_v42 }
0x1f40   :  { %4647 = vmatmul.mubr.msk.f32.vlgmr.msra.gmra.mrb[46].mxu1 %vm145_vm0, %v3938_v44 }
0x2013   :  { %v4648_v46 = vpop.f32.mrb[46].mxu1 }
0x2014   :  { %v4017_v29 = vadd.f32 %v4648_v46, %v5513_v21  ;;  %v4011_v47 = vpop.f32.mrb[47].mxu1 }
0x2015   :  { %v4012_v30 = vadd.f32 %v5513_v21, %v4011_v47 }
0x2016   :  { %v4021_v51 = vmax.f32 %v4017_v29, 0.0 }
0x2017   :  { %v4020_v49 = vmax.f32 %v4012_v30, 0.0 }
0x2019   :  { %4665 = vmatprep.mubr.msk.f32.mxu0 %vm2056_vm3, %v4020_v49 }
0x201a   :  { %4666 = vmatmul.mubr.msk.f32.vlgmr.msra.gmra.mrb[30].mxu0 %vm2056_vm3, %v4021_v51 }
0x20ed   :  { %v4667_v8 = vpop.f32.mrb[30].mxu0 }
0x20ee   :  { %v4104_v53 = vadd.f32 %v4667_v8, %v3908_v57  ;;  %v4094_v54 = vpop.f32.mrb[31].mxu0 }
0x20ef   :  { %v4103_v43 = vadd.f32 %v4094_v54, %v3907_v33 }
0x20f0   :  { %v4106_v56 = vadd.f32 %v5524_v35, %v4104_v53 }
0x20f1   :  { %v4105_v58 = vadd.f32 %v5524_v35, %v4103_v43 }
0x20f2   :  { %v4112_v60 = vsel %vm145_vm0, %v4106_v56, 0.0 }
0x20f3   :  { %4113 = vadd.xlane.f32.xlu1 %v4112_v60  ;;  %v4109_v40 = vsel %vm145_vm0, %v4105_v58, 0.0 }
0x20f4   :  { %4110 = vadd.xlane.f32.xlu0 %v4109_v40 }
0x2180   :  { %v4114_v21 = vpop.xlane.xlu1 %4113 }
0x2181   :  { %v4116_v61 = vmul.f32 0.03125, %v4114_v21  ;;  %v4111_v63 = vpop.xlane.xlu0 %4110 }
0x2182   :  { %v4115_v0 = vmul.f32 0.03125, %v4111_v63 }
0x2183   :  { %v4118_v4 = vsub.f32 %v4106_v56, %v4116_v61 }
0x2184   :  { %v4117_v6 = vsub.f32 %v4105_v58, %v4115_v0 }
0x2185   :  { %v4120_v1 = vmul.f32 %v4118_v4, %v4118_v4 }
0x2186   :  { %v4119_v7 = vmul.f32 %v4117_v6, %v4117_v6 }
0x2187   :  { %v4124_v11 = vsel %vm145_vm0, %v4120_v1, 0.0 }
0x2188   :  { %4125 = vadd.xlane.f32.xlu1 %v4124_v11  ;;  %v4121_v45 = vsel %vm145_vm0, %v4119_v7, 0.0 }
0x2189   :  { %4122 = vadd.xlane.f32.xlu0 %v4121_v45 }
0x2215   :  { %v4126_v35 = vpop.xlane.xlu1 %4125 }
0x2216   :  { %v4128_v9 = vmul.f32 0.03125, %v4126_v35  ;;  %v4123_v10 = vpop.xlane.xlu0 %4122 }
0x2217   :  { %v4127_v19 = vmul.f32 0.03125, %v4123_v10 }
0x2218   :  { %v4130_v14 = vadd.f32 1e-05, %v4128_v9 }
0x2219   :  { %v4129_v15 = vadd.f32 1e-05, %v4127_v19 }
0x221a   :  { %4845 = vrsqrt.f32 %v4130_v14 }
0x221b   :  { %4847 = vrsqrt.f32 %v4129_v15 }
0x2224   :  { %v4846_v17 = vpop.eup %4845 }
0x2225   :  { %v4848_v16 = vpop.eup %4847  ;;  %v4134_v48 = vmul.f32 %v4846_v17, %v4118_v4 }
0x2226   :  { %v4133_v52 = vmul.f32 %v4848_v16, %v4117_v6 }
0x2227   :  { %v4140_v57 = vmul.f32 %v4252_v31, %v4134_v48 }
0x2228   :  { %v4139_v33 = vmul.f32 %v4252_v31, %v4133_v52 }
0x2229   :  { %v4146_v59 = vadd.f32 %v4253_v50, %v4140_v57 }
0x222a   :  { %v4145_v41 = vadd.f32 %v4253_v50, %v4139_v33 }
0x222b   :  { %4148 = vst.msk [vmem:[#allocation11 + $0x8] sm:$0xff] %vm145_vm0, %v4146_v59 }
0x222c   :  { %4147 = vst.msk [vmem:[#allocation11] sm:$0xff] %vm145_vm0, %v4145_v41 }
0x222d   :  { %4972 = shalt.err (!%p4969_p2)
}
0x222e   :  { %s4973_s18 = scalar_lea.hbm %s5790_s13, 256 }
0x222f   :  { %p4974_p3 = scmp.ne.s32.totalorder %s5790_s13, %s4973_s18  ;;  %p4977_p4 = scmp.lt.u32.totalorder %s4973_s18, %s5790_s13 }
0x2231   :  { %p4979_p5 = pnand %p4977_p4, %p4974_p3 }
0x2233   :  { %4982 = shalt.err (!%p4979_p5)
}
0x2234   :  { %4160 = dma.vmem_to_hbm [thread:$0]  %s4155_s17, 256, %s5790_s13, [#allocation4], %s4993_s20, %s4993_s20, %s4994_s21  }
0x2235   :  { %4989 = dma.done.wait [#allocation4], 256  }
0x2236   :  { %4990 = vsyncadd [#allocation4], 4294967040 }
0x2237   :  { %4164 = vsyncpa [#allocation3], 1 }
0x2238   :  { %4165 = vsyncpa [#allocation6], 1 }
0x2239   :  { %4166 = vsyncpa [#allocation9], 1 }
0x223a   :  { %4167 = vsyncpa [#allocation4], 1 }

</bundles_post_ra>
